<compile_context>
chip_gen: v7x
topology: tpu7x:2x2x1
jax: 0.10.0
libtpu: 0.0.40
codegen_flags: <defaults>
</compile_context>

<pallas_src>
import functools

import jax
import jax.numpy as jnp
import numpy as np
from jax.experimental import pallas as pl
from jax.experimental.pallas import tpu as pltpu


# ---------------------------------------------------------------------------
# Fused Bottleneck kernel: one (image, row-strip) per grid step
# ---------------------------------------------------------------------------
def _bottleneck_kernel(*refs, R, W, C, C4, d, S, has_halo, use_im2col):
    if has_halo:
        (x_ref, xtop_ref, xbot_ref,
         w1_ref, w2_ref, w3_ref, b1_ref, b2_ref, b3_ref,
         o_ref, pad_ref) = refs
    else:
        (x_ref, w1_ref, w2_ref, w3_ref, b1_ref, b2_ref, b3_ref,
         o_ref, pad_ref) = refs
        xtop_ref = xbot_ref = None

    bf16 = jnp.bfloat16
    Rp = R + 2 * d

    xs = x_ref[0]                                      # (R, W, C4) io dtype
    x2d = xs.reshape(R * W, C4)

    # ---- conv1 (1x1, BN1 scale folded into w1) + bias + relu ---------------
    y1 = jnp.dot(x2d.astype(bf16), w1_ref[...],
                 preferred_element_type=jnp.float32)   # (R*W, C) f32
    y1 = jnp.maximum(y1 + b1_ref[...], 0.0)

    # ---- stage y1 into the padded scratch; only halo strips are zero-filled
    pad_ref[d:d + R, d:d + W, :] = y1.reshape(R, W, C)
    pad_ref[:, 0:d, :] = jnp.zeros((Rp, d, C), jnp.float32)       # left halo
    pad_ref[:, W + d:, :] = jnp.zeros((Rp, d, C), jnp.float32)    # right halo

    if has_halo:
        s = pl.program_id(1)
        # conv1 re-applied to the d neighbour rows above / below the strip;
        # at the true image boundary the halo is zero (matches padding=d).
        t2d = xtop_ref[0].reshape(d * W, C4).astype(bf16)
        y1t = jnp.maximum(
            jnp.dot(t2d, w1_ref[...], preferred_element_type=jnp.float32)
            + b1_ref[...], 0.0)
        y1t = jnp.where(s > 0, y1t, 0.0)
        pad_ref[0:d, d:d + W, :] = y1t.reshape(d, W, C)

        bt2d = xbot_ref[0].reshape(d * W, C4).astype(bf16)
        y1b = jnp.maximum(
            jnp.dot(bt2d, w1_ref[...], preferred_element_type=jnp.float32)
            + b1_ref[...], 0.0)
        y1b = jnp.where(s < S - 1, y1b, 0.0)
        pad_ref[d + R:, d:d + W, :] = y1b.reshape(d, W, C)
    else:
        pad_ref[0:d, d:d + W, :] = jnp.zeros((d, W, C), jnp.float32)
        pad_ref[d + R:, d:d + W, :] = jnp.zeros((d, W, C), jnp.float32)

    # ---- conv2 (3x3, dilated), BN2 scale folded into w2 --------------------
    if use_im2col:
        # small C: one long-K matmul on the im2col stack
        taps = [pad_ref[kh * d:kh * d + R, kw * d:kw * d + W, :].astype(bf16)
                for kh in range(3) for kw in range(3)]
        patch = jnp.concatenate(taps, axis=-1).reshape(R * W, 9 * C)
        y2 = jnp.dot(patch, w2_ref[...], preferred_element_type=jnp.float32)
    else:
        # large C: 9 K=C MXU matmuls accumulated in f32 (no big patch in VMEM)
        y2 = jnp.zeros((R * W, C), jnp.float32)
        for kh in range(3):
            for kw in range(3):
                k = kh * 3 + kw
                tap = pad_ref[kh * d:kh * d + R, kw * d:kw * d + W, :]
                y2 = y2 + jnp.dot(tap.reshape(R * W, C).astype(bf16),
                                  w2_ref[k * C:(k + 1) * C, :],
                                  preferred_element_type=jnp.float32)
    y2 = jnp.maximum(y2 + b2_ref[...], 0.0)

    # ---- conv3 (1x1, BN3 scale folded) + bias + residual + relu ------------
    y3 = jnp.dot(y2.astype(bf16), w3_ref[...],
                 preferred_element_type=jnp.float32)   # (R*W, C4) f32
    y3 = y3 + b3_ref[...] + x2d.astype(jnp.float32)    # residual add in f32
    o_ref[0] = jnp.maximum(y3, 0.0).reshape(R, W, C4).astype(o_ref.dtype)


# ---------------------------------------------------------------------------
# Helpers
# ---------------------------------------------------------------------------
def _auto_rows(H, W, C, C4, d, budget_bytes=4 * 1024 * 1024):
    """Largest divisor-of-H strip height (multiple of d) under a rough budget."""
    cands = [r for r in range(H, 0, -1) if H % r == 0 and r % d == 0]
    if not cands:
        return H
    per_row = W * (2 * C4 + 3 * C) * 4 * 2      # x + out + scratch-ish, dbl-buf
    for r in cands:
        if r * per_row <= budget_bytes:
            return r
    return cands[-1]


def _vmem_limit_bytes():
    try:
        cap = int(getattr(pltpu.get_tpu_info(), "vmem_capacity_bytes",
                          64 * 1024 * 1024))
    except Exception:
        cap = 64 * 1024 * 1024
    # ~100 MiB on 128 MiB parts (v5e/v6e), ~56 MiB on 64 MiB parts (v7x)
    return int(min(100 * 1024 * 1024,
                   max(cap - 8 * 1024 * 1024, 32 * 1024 * 1024)))


# ---------------------------------------------------------------------------
# Wrappers
# ---------------------------------------------------------------------------
def bottleneck_forward_nhwc(x_nhwc, params, dilation=1, *, rows_per_strip=None,
                            conv2_mode=None, io_dtype=jnp.float32):
    """Channels-last entry point (no layout transposes)."""
    N, H, W, C4 = x_nhwc.shape
    C = params["w1"].shape[1]
    assert C4 == 4 * C, "residual add requires inplanes == planes * expansion"
    d = int(dilation)

    # ---- row-strip size (divides H, multiple of d) --------------------------
    R = int(rows_per_strip) if rows_per_strip is not None else _auto_rows(
        H, W, C, C4, d)
    if H % d != 0 or R % d != 0 or H % R != 0:
        R = H                                  # fall back to whole-image strips
    S = H // R
    has_halo = S > 1

    # ---- conv2 strategy ------------------------------------------------------
    if conv2_mode is None:
        patch_bytes = R * W * 9 * C * 2
        conv2_mode = "im2col" if (C <= 128 and patch_bytes <= 8 * 1024 * 1024) \
            else "accumulate"
    use_im2col = conv2_mode == "im2col"

    # ---- fold BN scales into weights (f32), cast to bf16 for the MXU --------
    f32 = jnp.float32
    s1 = params["s1"].reshape(-1).astype(f32)
    s2 = params["s2"].reshape(-1).astype(f32)
    s3 = params["s3"].reshape(-1).astype(f32)
    w1 = (params["w1"].astype(f32) * s1[None, :]).astype(jnp.bfloat16)
    w2 = (params["w2"].astype(f32) * s2[None, None, None, :]
          ).reshape(9 * C, C).astype(jnp.bfloat16)
    w3 = (params["w3"].astype(f32) * s3[None, :]).astype(jnp.bfloat16)
    b1 = params["b1"].reshape(1, C).astype(f32)
    b2 = params["b2"].reshape(1, C).astype(f32)
    b3 = params["b3"].reshape(1, C4).astype(f32)

    x_in = x_nhwc.astype(io_dtype)

    # ---- specs ---------------------------------------------------------------
    # NOTE: for production use C4 % 128 == 0 (real ResNet widths) so the output
    # store is lane-dense; the toy test shape below is sub-128.
    const = lambda n, s: (0, 0)
    strip_idx = lambda n, s: (n, s, 0, 0)

    in_specs = [pl.BlockSpec((1, R, W, C4), strip_idx)]      # x strip
    args = [x_in]
    if has_halo:
        hb = H // d                                          # halo blocks along H
        top_idx = lambda n, s: (n, jnp.maximum(s * (R // d) - 1, 0), 0, 0)
        bot_idx = lambda n, s: (n, jnp.minimum((s + 1) * (R // d), hb - 1), 0, 0)
        in_specs += [pl.BlockSpec((1, d, W, C4), top_idx),   # rows above strip
                     pl.BlockSpec((1, d, W, C4), bot_idx)]   # rows below strip
        args += [x_in, x_in]
    in_specs += [
        pl.BlockSpec((C4, C), const),        # w1 (scale-folded)
        pl.BlockSpec((9 * C, C), const),     # w2 (im2col layout, scale-folded)
        pl.BlockSpec((C, C4), const),        # w3 (scale-folded)
        pl.BlockSpec((1, C), const),         # b1
        pl.BlockSpec((1, C), const),         # b2
        pl.BlockSpec((1, C4), const),        # b3
    ]
    args += [w1, w2, w3, b1, b2, b3]

    kern = functools.partial(_bottleneck_kernel, R=R, W=W, C=C, C4=C4, d=d,
                             S=S, has_halo=has_halo, use_im2col=use_im2col)

    io_bytes = jnp.dtype(io_dtype).itemsize
    cost = pl.CostEstimate(
        flops=int(2 * N * H * W * C * (2 * C4 + 9 * C)),
        transcendentals=0,
        bytes_accessed=int(N * H * W * C4 * 2 * io_bytes
                           + (C4 * C + 9 * C * C + C * C4) * 2
                           + (2 * C + C4) * 4),
    )

    out = pl.pallas_call(
        kern,
        out_shape=jax.ShapeDtypeStruct((N, H, W, C4), io_dtype),
        grid=(N, S),
        in_specs=in_specs,
        out_specs=pl.BlockSpec((1, R, W, C4), strip_idx),
        scratch_shapes=[pltpu.VMEM((R + 2 * d, W + 2 * d, C), jnp.float32)],
        compiler_params=pltpu.CompilerParams(
            dimension_semantics=("parallel", "parallel"),
            vmem_limit_bytes=_vmem_limit_bytes(),
        ),
        cost_estimate=cost,
    )(*args)
    return out


def bottleneck_forward(x_nchw, params, dilation=1, **kwargs):
    """PyTorch-parity entry point (NCHW). Transposes are boundary-only."""
    x = jnp.transpose(x_nchw, (0, 2, 3, 1))
    y = bottleneck_forward_nhwc(x, params, dilation=dilation, **kwargs)
    return jnp.transpose(y, (0, 3, 1, 2))


# ---------------------------------------------------------------------------
# Parameter init (deterministic, synthetic; BN folded to scale/bias)
# ---------------------------------------------------------------------------
def init_bottleneck_params(key, inplanes, planes, eps=1e-5):
    ks = jax.random.split(key, 15)

    def bn_fold(kg, kb, km, kv, c):
        gamma = jax.random.uniform(kg, (c,), jnp.float32, 0.5, 1.5)
        beta = 0.1 * jax.random.normal(kb, (c,), jnp.float32)
        mean = 0.1 * jax.random.normal(km, (c,), jnp.float32)
        var = jax.random.uniform(kv, (c,), jnp.float32, 0.5, 1.5)
        scale = gamma / jnp.sqrt(var + eps)
        bias = beta - mean * scale
        return scale.reshape(1, c), bias.reshape(1, c)

    w1 = 0.1 * jax.random.normal(ks[0], (inplanes, planes), jnp.float32)       # 1x1
    w2 = 0.1 * jax.random.normal(ks[1], (3, 3, planes, planes), jnp.float32)   # 3x3 HWIO
    w3 = 0.1 * jax.random.normal(ks[2], (planes, planes * 4), jnp.float32)     # 1x1
    s1, b1 = bn_fold(ks[3], ks[4], ks[5], ks[6], planes)
    s2, b2 = bn_fold(ks[7], ks[8], ks[9], ks[10], planes)
    s3, b3 = bn_fold(ks[11], ks[12], ks[13], ks[14], planes * 4)
    return dict(w1=w1, w2=w2, w3=w3, s1=s1, b1=b1, s2=s2, b2=b2, s3=s3, b3=b3)


# ---------------------------------------------------------------------------
# Pure-JAX reference (same scale-folded bf16 weights / f32 accumulate recipe)
# ---------------------------------------------------------------------------
def bottleneck_ref(x_nchw, params, dilation=1):
    x = jnp.transpose(x_nchw, (0, 2, 3, 1)).astype(jnp.float32)
    dn = ("NHWC", "HWIO", "NHWC")
    bf = jnp.bfloat16
    s1 = params["s1"].reshape(-1); s2 = params["s2"].reshape(-1)
    s3 = params["s3"].reshape(-1)
    b1 = params["b1"].reshape(-1); b2 = params["b2"].reshape(-1)
    b3 = params["b3"].reshape(-1)

    w1 = (params["w1"] * s1[None, :]).astype(bf).reshape(1, 1, *params["w1"].shape)
    w2 = (params["w2"] * s2[None, None, None, :]).astype(bf)
    w3 = (params["w3"] * s3[None, :]).astype(bf).reshape(1, 1, *params["w3"].shape)

    y = jax.lax.conv_general_dilated(x.astype(bf), w1, (1, 1), "VALID",
                                     dimension_numbers=dn,
                                     preferred_element_type=jnp.float32)
    y = jnp.maximum(y + b1, 0.0)
    y = jax.lax.conv_general_dilated(
        y.astype(bf), w2, (1, 1),
        [(dilation, dilation), (dilation, dilation)],
        rhs_dilation=(dilation, dilation), dimension_numbers=dn,
        preferred_element_type=jnp.float32)
    y = jnp.maximum(y + b2, 0.0)
    y = jax.lax.conv_general_dilated(y.astype(bf), w3, (1, 1), "VALID",
                                     dimension_numbers=dn,
                                     preferred_element_type=jnp.float32)
    y = jnp.maximum(y + b3 + x, 0.0)
    return jnp.transpose(y, (0, 3, 1, 2))


# ---------------------------------------------------------------------------
# Main
# ---------------------------------------------------------------------------
if __name__ == "__main__":
    key = jax.random.PRNGKey(0)
    kx, kp = jax.random.split(key)

    N, planes, H, W = 2, 8, 16, 16
    inplanes = planes * 4            # downsample is None => inplanes == 4*planes
    x = jax.random.normal(kx, (N, inplanes, H, W), jnp.float32)   # NCHW (PyTorch)
    params = init_bottleneck_params(kp, inplanes, planes)

    # Exercise: whole-image vs row-strips (with halo), im2col vs 9-tap conv2,
    # and both dilations used by EMANet's ResNet.
    configs = [
        dict(dilation=1, rows_per_strip=None, conv2_mode=None),        # 1 strip, im2col
        dict(dilation=1, rows_per_strip=8, conv2_mode="im2col"),       # strips + halo
        dict(dilation=2, rows_per_strip=8, conv2_mode="accumulate"),   # strips + 9-tap
        dict(dilation=2, rows_per_strip=None, conv2_mode="accumulate"),
    ]
    for cfg in configs:
        out = jax.block_until_ready(bottleneck_forward(x, params, **cfg))
        ref = bottleneck_ref(x, params, dilation=cfg["dilation"])
        np.testing.assert_allclose(np.asarray(out), np.asarray(ref),
                                   rtol=5e-3, atol=5e-3)

    # bf16-I/O path (halves HBM traffic on mem-bound configs); reference sees
    # the same bf16-rounded input, output rounding absorbed by the tolerance.
    x_bf_round = x.astype(jnp.bfloat16).astype(jnp.float32)
    out_bf = jax.block_until_ready(
        bottleneck_forward(x, params, dilation=1, rows_per_strip=8,
                           io_dtype=jnp.bfloat16))
    ref_bf = bottleneck_ref(x_bf_round, params, dilation=1)
    np.testing.assert_allclose(np.asarray(jnp.asarray(out_bf, jnp.float32)),
                               np.asarray(ref_bf), rtol=2e-2, atol=2e-2)

    print("KERNEL_OK")
</pallas_src>

<mosaic_0001>
module attributes {stable_mosaic.version = 11 : i64} {
  func.func @_bottleneck_kernel(%arg0: i32, %arg1: i32, %arg2: memref<1x16x16x32xf32, #tpu.memory_space<vmem>>, %arg3: memref<32x8xbf16, #tpu.memory_space<vmem>>, %arg4: memref<72x8xbf16, #tpu.memory_space<vmem>>, %arg5: memref<8x32xbf16, #tpu.memory_space<vmem>>, %arg6: memref<1x8xf32, #tpu.memory_space<vmem>>, %arg7: memref<1x8xf32, #tpu.memory_space<vmem>>, %arg8: memref<1x32xf32, #tpu.memory_space<vmem>>, %arg9: memref<1x16x16x32xf32, #tpu.memory_space<vmem>>, %arg10: memref<18x18x8xf32, #tpu.memory_space<vmem>>) attributes {dimension_semantics = [#tpu.dimension_semantics<parallel>, #tpu.dimension_semantics<parallel>], iteration_bounds = array<i64: 2, 1>, scalar_prefetch = 0 : i64, scratch_operands = 1 : i64, tpu.core_type = #tpu.core_type<tc>, window_params = [{transform_indices = @transform_0, window_bounds = array<i64: 1, 16, 16, 32>}, {pipeline_mode = #tpu.pipeline_mode<synchronous>, transform_indices = @transform_1, window_bounds = array<i64: 32, 8>}, {pipeline_mode = #tpu.pipeline_mode<synchronous>, transform_indices = @transform_2, window_bounds = array<i64: 72, 8>}, {pipeline_mode = #tpu.pipeline_mode<synchronous>, transform_indices = @transform_3, window_bounds = array<i64: 8, 32>}, {pipeline_mode = #tpu.pipeline_mode<synchronous>, transform_indices = @transform_4, window_bounds = array<i64: 1, 8>}, {pipeline_mode = #tpu.pipeline_mode<synchronous>, transform_indices = @transform_5, window_bounds = array<i64: 1, 8>}, {pipeline_mode = #tpu.pipeline_mode<synchronous>, transform_indices = @transform_6, window_bounds = array<i64: 1, 32>}, {transform_indices = @transform_7, window_bounds = array<i64: 1, 16, 16, 32>}]} {
    %c0 = arith.constant 0 : index
    %c0_0 = arith.constant 0 : index
    %c0_1 = arith.constant 0 : index
    %c0_2 = arith.constant 0 : index
    %0 = vector.load %arg2[%c0, %c0_0, %c0_1, %c0_2] : memref<1x16x16x32xf32, #tpu.memory_space<vmem>>, vector<1x16x16x32xf32>
    %1 = vector.shape_cast %0 : vector<1x16x16x32xf32> to vector<16x16x32xf32>
    %2 = vector.shape_cast %1 : vector<16x16x32xf32> to vector<256x32xf32>
    %3 = arith.truncf %2 : vector<256x32xf32> to vector<256x32xbf16>
    %c0_3 = arith.constant 0 : index
    %c0_4 = arith.constant 0 : index
    %4 = vector.load %arg3[%c0_3, %c0_4] : memref<32x8xbf16, #tpu.memory_space<vmem>>, vector<32x8xbf16>
    %cst = arith.constant dense<0.000000e+00> : vector<256x8xf32>
    %5 = tpu.matmul %3, %4, %cst {dimension_numbers = #tpu.dot_dimension_numbers<[1], [0], [0], [1], [0, 0, 1, 1], [], []>} : vector<256x32xbf16>, vector<32x8xbf16>, vector<256x8xf32> -> vector<256x8xf32>
    %c0_5 = arith.constant 0 : index
    %c0_6 = arith.constant 0 : index
    %6 = vector.load %arg6[%c0_5, %c0_6] : memref<1x8xf32, #tpu.memory_space<vmem>>, vector<1x8xf32>
    %7 = vector.broadcast %6 : vector<1x8xf32> to vector<256x8xf32>
    %8 = arith.addf %5, %7 : vector<256x8xf32>
    %cst_7 = arith.constant 0.000000e+00 : f32
    %9 = vector.broadcast %cst_7 : f32 to vector<256x8xf32>
    %10 = arith.maximumf %8, %9 : vector<256x8xf32>
    %11 = vector.shape_cast %10 : vector<256x8xf32> to vector<16x16x8xf32>
    %c1 = arith.constant 1 : index
    %c1_8 = arith.constant 1 : index
    %c0_9 = arith.constant 0 : index
    %12 = vector.load %arg10[%c1, %c1_8, %c0_9] : memref<18x18x8xf32, #tpu.memory_space<vmem>>, vector<16x16x8xf32>
    tpu.vector_store %arg10[%c1, %c1_8, %c0_9], %11 {strides = array<i32>} : memref<18x18x8xf32, #tpu.memory_space<vmem>>, vector<16x16x8xf32>,
    %cst_10 = arith.constant 0.000000e+00 : f32
    %13 = vector.broadcast %cst_10 : f32 to vector<18x1x8xf32>
    %c0_11 = arith.constant 0 : index
    %c0_12 = arith.constant 0 : index
    %c0_13 = arith.constant 0 : index
    %14 = vector.load %arg10[%c0_11, %c0_12, %c0_13] : memref<18x18x8xf32, #tpu.memory_space<vmem>>, vector<18x1x8xf32>
    tpu.vector_store %arg10[%c0_11, %c0_12, %c0_13], %13 {strides = array<i32>} : memref<18x18x8xf32, #tpu.memory_space<vmem>>, vector<18x1x8xf32>,
    %cst_14 = arith.constant 0.000000e+00 : f32
    %15 = vector.broadcast %cst_14 : f32 to vector<18x1x8xf32>
    %c0_15 = arith.constant 0 : index
    %c17 = arith.constant 17 : index
    %c0_16 = arith.constant 0 : index
    %16 = vector.load %arg10[%c0_15, %c17, %c0_16] : memref<18x18x8xf32, #tpu.memory_space<vmem>>, vector<18x1x8xf32>
    tpu.vector_store %arg10[%c0_15, %c17, %c0_16], %15 {strides = array<i32>} : memref<18x18x8xf32, #tpu.memory_space<vmem>>, vector<18x1x8xf32>,
    %cst_17 = arith.constant 0.000000e+00 : f32
    %17 = vector.broadcast %cst_17 : f32 to vector<1x16x8xf32>
    %c0_18 = arith.constant 0 : index
    %c1_19 = arith.constant 1 : index
    %c0_20 = arith.constant 0 : index
    %18 = vector.load %arg10[%c0_18, %c1_19, %c0_20] : memref<18x18x8xf32, #tpu.memory_space<vmem>>, vector<1x16x8xf32>
    tpu.vector_store %arg10[%c0_18, %c1_19, %c0_20], %17 {strides = array<i32>} : memref<18x18x8xf32, #tpu.memory_space<vmem>>, vector<1x16x8xf32>,
    %cst_21 = arith.constant 0.000000e+00 : f32
    %19 = vector.broadcast %cst_21 : f32 to vector<1x16x8xf32>
    %c17_22 = arith.constant 17 : index
    %c1_23 = arith.constant 1 : index
    %c0_24 = arith.constant 0 : index
    %20 = vector.load %arg10[%c17_22, %c1_23, %c0_24] : memref<18x18x8xf32, #tpu.memory_space<vmem>>, vector<1x16x8xf32>
    tpu.vector_store %arg10[%c17_22, %c1_23, %c0_24], %19 {strides = array<i32>} : memref<18x18x8xf32, #tpu.memory_space<vmem>>, vector<1x16x8xf32>,
    %c0_25 = arith.constant 0 : index
    %c0_26 = arith.constant 0 : index
    %c0_27 = arith.constant 0 : index
    %21 = vector.load %arg10[%c0_25, %c0_26, %c0_27] : memref<18x18x8xf32, #tpu.memory_space<vmem>>, vector<16x16x8xf32>
    %22 = arith.truncf %21 : vector<16x16x8xf32> to vector<16x16x8xbf16>
    %c0_28 = arith.constant 0 : index
    %c1_29 = arith.constant 1 : index
    %c0_30 = arith.constant 0 : index
    %23 = vector.load %arg10[%c0_28, %c1_29, %c0_30] : memref<18x18x8xf32, #tpu.memory_space<vmem>>, vector<16x16x8xf32>
    %24 = arith.truncf %23 : vector<16x16x8xf32> to vector<16x16x8xbf16>
    %c0_31 = arith.constant 0 : index
    %c2 = arith.constant 2 : index
    %c0_32 = arith.constant 0 : index
    %25 = vector.load %arg10[%c0_31, %c2, %c0_32] : memref<18x18x8xf32, #tpu.memory_space<vmem>>, vector<16x16x8xf32>
    %26 = arith.truncf %25 : vector<16x16x8xf32> to vector<16x16x8xbf16>
    %c1_33 = arith.constant 1 : index
    %c0_34 = arith.constant 0 : index
    %c0_35 = arith.constant 0 : index
    %27 = vector.load %arg10[%c1_33, %c0_34, %c0_35] : memref<18x18x8xf32, #tpu.memory_space<vmem>>, vector<16x16x8xf32>
    %28 = arith.truncf %27 : vector<16x16x8xf32> to vector<16x16x8xbf16>
    %c1_36 = arith.constant 1 : index
    %c1_37 = arith.constant 1 : index
    %c0_38 = arith.constant 0 : index
    %29 = vector.load %arg10[%c1_36, %c1_37, %c0_38] : memref<18x18x8xf32, #tpu.memory_space<vmem>>, vector<16x16x8xf32>
    %30 = arith.truncf %29 : vector<16x16x8xf32> to vector<16x16x8xbf16>
    %c1_39 = arith.constant 1 : index
    %c2_40 = arith.constant 2 : index
    %c0_41 = arith.constant 0 : index
    %31 = vector.load %arg10[%c1_39, %c2_40, %c0_41] : memref<18x18x8xf32, #tpu.memory_space<vmem>>, vector<16x16x8xf32>
    %32 = arith.truncf %31 : vector<16x16x8xf32> to vector<16x16x8xbf16>
    %c2_42 = arith.constant 2 : index
    %c0_43 = arith.constant 0 : index
    %c0_44 = arith.constant 0 : index
    %33 = vector.load %arg10[%c2_42, %c0_43, %c0_44] : memref<18x18x8xf32, #tpu.memory_space<vmem>>, vector<16x16x8xf32>
    %34 = arith.truncf %33 : vector<16x16x8xf32> to vector<16x16x8xbf16>
    %c2_45 = arith.constant 2 : index
    %c1_46 = arith.constant 1 : index
    %c0_47 = arith.constant 0 : index
    %35 = vector.load %arg10[%c2_45, %c1_46, %c0_47] : memref<18x18x8xf32, #tpu.memory_space<vmem>>, vector<16x16x8xf32>
    %36 = arith.truncf %35 : vector<16x16x8xf32> to vector<16x16x8xbf16>
    %c2_48 = arith.constant 2 : index
    %c2_49 = arith.constant 2 : index
    %c0_50 = arith.constant 0 : index
    %37 = vector.load %arg10[%c2_48, %c2_49, %c0_50] : memref<18x18x8xf32, #tpu.memory_space<vmem>>, vector<16x16x8xf32>
    %38 = arith.truncf %37 : vector<16x16x8xf32> to vector<16x16x8xbf16>
    %39 = tpu.concatenate %22, %24, %26, %28, %30, %32, %34, %36, %38 in 2 : vector<16x16x8xbf16>, vector<16x16x8xbf16>, vector<16x16x8xbf16>, vector<16x16x8xbf16>, vector<16x16x8xbf16>, vector<16x16x8xbf16>, vector<16x16x8xbf16>, vector<16x16x8xbf16>, vector<16x16x8xbf16> -> vector<16x16x72xbf16>
    %40 = vector.shape_cast %39 : vector<16x16x72xbf16> to vector<256x72xbf16>
    %c0_51 = arith.constant 0 : index
    %c0_52 = arith.constant 0 : index
    %41 = vector.load %arg4[%c0_51, %c0_52] : memref<72x8xbf16, #tpu.memory_space<vmem>>, vector<72x8xbf16>
    %cst_53 = arith.constant dense<0.000000e+00> : vector<256x8xf32>
    %42 = tpu.matmul %40, %41, %cst_53 {dimension_numbers = #tpu.dot_dimension_numbers<[1], [0], [0], [1], [0, 0, 1, 1], [], []>} : vector<256x72xbf16>, vector<72x8xbf16>, vector<256x8xf32> -> vector<256x8xf32>
    %c0_54 = arith.constant 0 : index
    %c0_55 = arith.constant 0 : index
    %43 = vector.load %arg7[%c0_54, %c0_55] : memref<1x8xf32, #tpu.memory_space<vmem>>, vector<1x8xf32>
    %44 = vector.broadcast %43 : vector<1x8xf32> to vector<256x8xf32>
    %45 = arith.addf %42, %44 : vector<256x8xf32>
    %cst_56 = arith.constant 0.000000e+00 : f32
    %46 = vector.broadcast %cst_56 : f32 to vector<256x8xf32>
    %47 = arith.maximumf %45, %46 : vector<256x8xf32>
    %48 = arith.truncf %47 : vector<256x8xf32> to vector<256x8xbf16>
    %c0_57 = arith.constant 0 : index
    %c0_58 = arith.constant 0 : index
    %49 = vector.load %arg5[%c0_57, %c0_58] : memref<8x32xbf16, #tpu.memory_space<vmem>>, vector<8x32xbf16>
    %cst_59 = arith.constant dense<0.000000e+00> : vector<256x32xf32>
    %50 = tpu.matmul %48, %49, %cst_59 {dimension_numbers = #tpu.dot_dimension_numbers<[1], [0], [0], [1], [0, 0, 1, 1], [], []>} : vector<256x8xbf16>, vector<8x32xbf16>, vector<256x32xf32> -> vector<256x32xf32>
    %c0_60 = arith.constant 0 : index
    %c0_61 = arith.constant 0 : index
    %51 = vector.load %arg8[%c0_60, %c0_61] : memref<1x32xf32, #tpu.memory_space<vmem>>, vector<1x32xf32>
    %52 = vector.broadcast %51 : vector<1x32xf32> to vector<256x32xf32>
    %53 = arith.addf %50, %52 : vector<256x32xf32>
    %54 = arith.addf %53, %2 : vector<256x32xf32>
    %cst_62 = arith.constant 0.000000e+00 : f32
    %55 = vector.broadcast %cst_62 : f32 to vector<256x32xf32>
    %56 = arith.maximumf %54, %55 : vector<256x32xf32>
    %57 = vector.shape_cast %56 : vector<256x32xf32> to vector<16x16x32xf32>
    %c0_63 = arith.constant 0 : index
    %c0_64 = arith.constant 0 : index
    %c0_65 = arith.constant 0 : index
    %c0_66 = arith.constant 0 : index
    %58 = vector.load %arg9[%c0_63, %c0_64, %c0_65, %c0_66] : memref<1x16x16x32xf32, #tpu.memory_space<vmem>>, vector<1x16x16x32xf32>
    %59 = vector.shape_cast %58 : vector<1x16x16x32xf32> to vector<16x16x32xf32>
    %60 = vector.shape_cast %57 : vector<16x16x32xf32> to vector<1x16x16x32xf32>
    tpu.vector_store %arg9[%c0_63, %c0_64, %c0_65, %c0_66], %60 {strides = array<i32>} : memref<1x16x16x32xf32, #tpu.memory_space<vmem>>, vector<1x16x16x32xf32>,
    return
  }
  func.func @transform_0(%arg0: i32, %arg1: i32) -> (i32, i32, i32, i32) {
    %c0_i32 = arith.constant 0 : i32
    %c0_i32_0 = arith.constant 0 : i32
    %c0_i32_1 = arith.constant 0 : i32
    return %arg0, %arg1, %c0_i32, %c0_i32_0 : i32, i32, i32, i32
  }
  func.func @transform_1(%arg0: i32, %arg1: i32) -> (i32, i32) {
    %c0_i32 = arith.constant 0 : i32
    %c0_i32_0 = arith.constant 0 : i32
    %c0_i32_1 = arith.constant 0 : i32
    return %c0_i32, %c0_i32_0 : i32, i32
  }
  func.func @transform_2(%arg0: i32, %arg1: i32) -> (i32, i32) {
    %c0_i32 = arith.constant 0 : i32
    %c0_i32_0 = arith.constant 0 : i32
    %c0_i32_1 = arith.constant 0 : i32
    return %c0_i32, %c0_i32_0 : i32, i32
  }
  func.func @transform_3(%arg0: i32, %arg1: i32) -> (i32, i32) {
    %c0_i32 = arith.constant 0 : i32
    %c0_i32_0 = arith.constant 0 : i32
    %c0_i32_1 = arith.constant 0 : i32
    return %c0_i32, %c0_i32_0 : i32, i32
  }
  func.func @transform_4(%arg0: i32, %arg1: i32) -> (i32, i32) {
    %c0_i32 = arith.constant 0 : i32
    %c0_i32_0 = arith.constant 0 : i32
    %c0_i32_1 = arith.constant 0 : i32
    return %c0_i32, %c0_i32_0 : i32, i32
  }
  func.func @transform_5(%arg0: i32, %arg1: i32) -> (i32, i32) {
    %c0_i32 = arith.constant 0 : i32
    %c0_i32_0 = arith.constant 0 : i32
    %c0_i32_1 = arith.constant 0 : i32
    return %c0_i32, %c0_i32_0 : i32, i32
  }
  func.func @transform_6(%arg0: i32, %arg1: i32) -> (i32, i32) {
    %c0_i32 = arith.constant 0 : i32
    %c0_i32_0 = arith.constant 0 : i32
    %c0_i32_1 = arith.constant 0 : i32
    return %c0_i32, %c0_i32_0 : i32, i32
  }
  func.func @transform_7(%arg0: i32, %arg1: i32) -> (i32, i32, i32, i32) {
    %c0_i32 = arith.constant 0 : i32
    %c0_i32_0 = arith.constant 0 : i32
    %c0_i32_1 = arith.constant 0 : i32
    return %arg0, %arg1, %c0_i32, %c0_i32_0 : i32, i32, i32, i32
  }
}

</mosaic_0001>

<bundles_post_ra>
// kernel: tpu_custom_call.1
= control target key start
LH: loop header
LB: loop body
LE: loop exit
PB: predicated region body
PF: predicated region fallthrough
CT: control target
= control target key end

     0   :  { %12 = vsyncpa [#allocation4], 0  ;;  %s4100_s0 = inlined_call_operand.hbm [shape: f32[2,16,16,32], index: 0, kind: input, shape index: {}]   ;;  %s4101_s1 = inlined_call_operand.vmem [shape: bf16[32,8], index: 1, kind: input, shape index: {}]   ;;  %s4102_s2 = inlined_call_operand.vmem [shape: bf16[72,8], index: 2, kind: input, shape index: {}]   ;;  %s4103_s3 = inlined_call_operand.vmem [shape: bf16[8,32], index: 3, kind: input, shape index: {}]   ;;  %s4104_s4 = inlined_call_operand.vmem [shape: f32[1,8], index: 4, kind: input, shape index: {}]   ;;  %s4105_s5 = inlined_call_operand.vmem [shape: f32[1,8], index: 5, kind: input, shape index: {}]   ;;  %s4106_s6 = inlined_call_operand.vmem [shape: f32[1,32], index: 6, kind: input, shape index: {}]   ;;  %s4107_s7 = inlined_call_operand.hbm [shape: f32[2,16,16,32], index: 7, kind: output, shape index: {}]  }
   0x1   :  { %14 = vsyncpa [#allocation4 + $0x1], 0 }
   0x2   :  { %15 = vsyncpa [#allocation5], 0 }
   0x3   :  { %17 = vsyncpa [#allocation5 + $0x1], 0  ;;  %s3042_s24 = smov 0   ;;  %s3044_s25 = smov 0  }
   0x4   :  { %s3046_s26 = smov 0   ;;  %s3048_s27 = smov 0  }
   0x5   :  { %s3050_s28 = smov 0   ;;  %s3052_s29 = smov 0  }
   0x6 LB: > { %s2512_s30 = sadd.s32 4294967295, %s2986_s29   ;;  %s2513_s8 = sadd.s32 4294967294, %s2986_s29   ;;  %s2986_s29 = sphi %s3052_s29, %s23_s29   ;;  %s2982_s28 = sphi %s3050_s28, %s4127_s28   ;;  %s2978_s27 = sphi %s3048_s27, %s4126_s27   ;;  %s2974_s26 = sphi %s3046_s26, %s4125_s26   ;;  %s2970_s25 = sphi %s3044_s25, %s4124_s25   ;;  %s2966_s24 = sphi %s3042_s24, %s4123_s24  }
   0x7   : > { %s35_s9 = sadd.s32 1, %s2982_s28  ;;  %s44_s10 = sadd.s32 1, %s2974_s26 }
   0x8   : > { %p37_p0 = scmp.ge.s32.totalorder %s35_s9, 2  ;;  %p51_p1 = scmp.ne.s32.totalorder %s2974_s26, %s2970_s25 }
   0x9   : > { %p52_p2 = scmp.eq.s32.totalorder %s2986_s29, 0  ;;  %p57_p3 = scmp.ne.s32.totalorder %s2970_s25, %s2966_s24 }
   0xa   : > { %s4129_s9 = smov (%p37_p0, %s35_s9), 0  ;;  %p58_p5 = scmp.eq.s32.totalorder %s2512_s30, 0 }
   0xb   : > { %p3083_p4 = por %p52_p2, %p51_p1  ;;  %s39_s12 = ssub.s32 %s2982_s28, %s4129_s9 }
   0xc   : > { %p209_p6 = scmp.eq.s32.totalorder %s2512_s30, 1  ;;  %p42_p7 = scmp.eq.s32.totalorder %s39_s12, 0 }
   0xd   : > { %p3089_p8 = por %p58_p5, %p57_p3  ;;  %p215_p10 = scmp.eq.s32.totalorder %s2513_s8, 1 }
   0xe   : > { %p3093_p9 = por %p209_p6, %p51_p1  ;;  %p2773_p13 = scmp.lt.s32.totalorder %s2986_s29, 2 }
   0xf   : > { %s3098_s15 = scalar_select %p42_p7, %s2974_s26, %s44_s10  }
  0x10   : > { %s4114_s14 = scalar_select %p3093_p9, 1, 0 }
  0x11   : > { %p3100_p11 = por %p215_p10, %p57_p3  ;;  %s253_s17 = sand.u32 1, %s2974_s26  }
  0x12   : > { %s2516_s18 = sshll.u32 %s253_s17, 8  ;;  %s2585_s19 = sshll.u32 %s2982_s28, 12 }
  0x13   : > { %s4115_s16 = scalar_select %p3100_p11, 1, 0 }
  0x14   : > { %s3111_s22 = scalar_lea.hbm %s4100_s0, %s2585_s19  ;;  %s257_s23 = scalar_lea.vmem [#allocation3], %s2516_s18 }
  0x15   : > { %s267_s30 = sshll.u32 %s257_s23, 4  ;;  %p3117_p0 = pnand %p2773_p13, %p3083_p4  ;;  %s3113_s30 = int_to_ptr.vmem [resolvable:$true] %s267_s30 }
  0x16   : > { %s3122_s10 = scalar_lea.sflag [#allocation4], %s253_s17  ;;  %s2874_s12 = scalar_lea.hbm %s3111_s22, 4096 }
  0x17   : > { %p2875_p2 = scmp.ne.s32.totalorder %s3111_s22, %s2874_s12  ;;  %p2876_p3 = pneg %p3117_p0 }
  0x18   : > { %s2879_s11 = scalar_lea.hbm %s4100_s0, 8192  ;;  %p2880_p4 = scmp.lt.u32.totalorder %s3111_s22, %s4100_s0 }
  0x19   : > { %p2877_p5 = pnand %p2876_p3, %p2875_p2  ;;  %p2881_p7 = scmp.lt.u32.totalorder %s2879_s11, %s2874_s12 }
  0x1a   : > { %p2883_p13 = scmp.lt.u32.totalorder %s2874_s12, %s3111_s22 }
  0x1b   : > { %p2878_p6 = pneg %p2877_p5  ;;  %p2882_p10 = por %p2881_p7, %p2880_p4 }
  0x1d   : > { %p2884_p12 = por %p2883_p13, %p2882_p10 }
  0x1f   : > { %p2885_p1 = pnand %p2884_p12, %p2878_p6 }
  0x21   : > { %2888 = shalt.err (!%p2885_p1)
}
  0x22   : > { %s2889_s17 = scalar_lea.vmem %s3113_s30, 4096  ;;  %s2988_s23 = smov [#allocation3]  }
  0x23   : > { %p2890_p2 = scmp.ne.s32.totalorder %s3113_s30, %s2889_s17  ;;  %s2894_s18 = sshll.u32 %s2988_s23, 4  ;;  %s2895_s18 = int_to_ptr.vmem [resolvable:$false] %s2894_s18 }
  0x24   : > { %s2896_s19 = scalar_lea.vmem %s2895_s18, 8192  ;;  %p2897_p9 = scmp.lt.s32.totalorder %s3113_s30, %s2895_s18 }
  0x25   : > { %p2892_p5 = pnand %p2890_p2, %p2876_p3  ;;  %p2898_p4 = scmp.lt.s32.totalorder %s2896_s19, %s2889_s17 }
  0x27   : > { %p2893_p11 = pneg %p2892_p5  ;;  %p2899_p7 = por %p2898_p4, %p2897_p9 }
  0x29   : > { %p2900_p10 = pnand %p2899_p7, %p2893_p11 }
  0x2b   : > { %2903 = shalt.err (!%p2900_p10)
}
  0x2c   : > { %s2989_s12 = smov 128   ;;  %s2990_s11 = smov 8  }
  0x2d   : > { %2768 = dma.hbm_to_vmem [thread:$0]  (!%p3117_p0), %s3111_s22, 4096, %s3113_s30, %s3122_s10, %s2989_s12, %s2989_s12, %s2990_s11  }
  0x2e   : > { %p275_p12 = scmp.lt.s32.totalorder %s2986_s29, 3  ;;  %p4117_p1 = scmp.ge.s32.totalorder %s2986_s29, 1 }
  0x30   : > { %p276_p3 = pnand %p4117_p1, %p275_p12 }
  0x31   : > { %s3154_s20 = sand.u32 (!%p276_p3), 1, %s2970_s25  }
  0x32   : > { %279 = sbr.rel (%p276_p3) target bundleno = 1118 (0x45e), region = 48  ;;  %s4109_s21 = sshll.u32 (!%p276_p3), %s3154_s20, 8 }
  0x33   : > { %s282_s17 = scalar_lea.sflag (!%p276_p3), [#allocation4], %s3154_s20  ;;  %s3160_s23 = scalar_lea.vmem (!%p276_p3), [#allocation3], %s4109_s21 }
  0x39   : > { %2957 = dma.done.wait (%p3089_p8), %s282_s17, 4096  }
  0x3a   : > { %2959 = vsyncadd (%p3089_p8), %s282_s17, 4294963200  ;;  %v2835_v0 = vld [vmem:[%s4101_s1] sm:$0xff]   ;;  %v2836_v1 = vld [vmem:[%s4101_s1 + $0x8] sm:$0xff]   ;;  %vm390_vm0 = vcmask 261120   ;;  %vm633_vm1 = vcmask 64512   ;;  %vm666_vm2 = vcmask 57344  }
  0x3b   : > { %2643 = vmatprep.subr.bf16.mxu0 %v2835_v0  ;;  %v319_v2 = vld [vmem:[%s3160_s23] sm:$0xff]  ;;  %v320_v3 = vld [vmem:[%s3160_s23 + $0x8] sm:$0xff]  ;;  %v321_v4 = vld [vmem:[%s3160_s23 + $0x10] sm:$0xff]  ;;  %2755 = vmatprep.subr.bf16.mxu1 %v2835_v0  ;;  %v2991_v50 = vmov 0.0   ;;  %s2992_s13 = smov 8   ;;  %s2993_s18 = smov 16  }
  0x3c   : > { %2644 = vmatpush3.bf16.msra.mxu0 %v2835_v0  ;;  %v351_v5 = vpack.c.bf16 %v320_v3, %v319_v2  ;;  %v322_v6 = vld [vmem:[%s3160_s23 + $0x18] sm:$0xff]  ;;  %2757 = vmatpush3.bf16.msra.mxu1 %v2835_v0  ;;  %v335_v7 = vld [vmem:[%s3160_s23 + $0x80] sm:$0xff]  ;;  %v336_v8 = vld [vmem:[%s3160_s23 + $0x88] sm:$0xff]  ;;  %703 = vst.msk [vmem:[#allocation2 + $0x1] sm:$0xff] %vm633_vm1, %v2991_v50  ;;  %s2994_s11 = smov 48   ;;  %s4110_s17 = smov 24  }
  0x3d   : > { %2645 = vmatprep.subr.bf16.mxu0 %v2836_v1  ;;  %2756 = vmatprep.subr.bf16.mxu1 %v2836_v1  ;;  %v359_v9 = vpack.c.bf16 %v336_v8, %v335_v7  ;;  %v337_v10 = vld [vmem:[%s3160_s23 + $0x90] sm:$0xff]  ;;  %v338_v11 = vld [vmem:[%s3160_s23 + $0x98] sm:$0xff]  ;;  %v323_v12 = vld [vmem:[%s3160_s23 + $0x20] sm:$0xff]  ;;  %v352_v14 = vpack.c.bf16 %v322_v6, %v321_v4  ;;  %704 = vst.msk [vmem:[#allocation2 + $0x9] sm:$0xff] %vm633_vm1, %v2991_v50  ;;  %s2996_s22 = smov 56   ;;  %s2997_s30 = smov 32  }
  0x3e   : > { %2647 = vmatprep.mubr.msk.bf16.mxu0 %vm390_vm0, %v351_v5  ;;  %v324_v13 = vld [vmem:[%s3160_s23 + $0x28] sm:$0xff]  ;;  %v360_v15 = vpack.c.bf16 %v338_v11, %v337_v10  ;;  %v339_v16 = vld [vmem:[%s3160_s23 + $0xa0] sm:$0xff]  ;;  %v325_v20 = vld [vmem:[%s3160_s23 + $0x30] sm:$0xff]  ;;  %706 = vst.msk [vmem:[#allocation2 + $0x199] sm:$0xff] %vm633_vm1, %v2991_v50  ;;  %s2998_s8 = smov 64   ;;  %s2999_s10 = smov 40  }
  0x3f   : > { %2663 = vmatprep.mubr.msk.bf16.mxu1 %vm390_vm0, %v359_v9  ;;  %v340_v17 = vld [vmem:[%s3160_s23 + $0xa8] sm:$0xff]  ;;  %v353_v18 = vpack.c.bf16 %v324_v13, %v323_v12  ;;  %v326_v21 = vld [vmem:[%s3160_s23 + $0x38] sm:$0xff]  ;;  %v341_v22 = vld [vmem:[%s3160_s23 + $0xb0] sm:$0xff]  ;;  %707 = vst.msk [vmem:[#allocation2 + $0x1a1] sm:$0xff] %vm633_vm1, %v2991_v50  ;;  %vm1879_vm3 = vcmask 1043456   ;;  %s4118_s21 = smov 24  }
  0x40   : > { %2646 = vmatpush3.bf16.msra.mxu0 %v2836_v1  ;;  %2758 = vmatpush3.bf16.msra.mxu1 %v2836_v1  ;;  %v361_v19 = vpack.c.bf16 %v340_v17, %v339_v16  ;;  %v342_v23 = vld [vmem:[%s3160_s23 + $0xb8] sm:$0xff]  ;;  %v327_v24 = vld [vmem:[%s3160_s23 + $0x40] sm:$0xff]  ;;  %v328_v25 = vld [vmem:[%s3160_s23 + $0x48] sm:$0xff]  ;;  %v354_v28 = vpack.c.bf16 %v326_v21, %v325_v20  ;;  %685 = vst.msk [vmem:[#allocation2 + $0x11] sm:$0x1] %vm666_vm2, %v2991_v50  ;;  %vm1573_vm4 = vcmask 130048  }
  0x41   : > { %v343_v26 = vld [vmem:[%s3160_s23 + $0xc0] sm:$0xff]  ;;  %v344_v27 = vld [vmem:[%s3160_s23 + $0xc8] sm:$0xff]  ;;  %v362_v29 = vpack.c.bf16 %v342_v23, %v341_v22  ;;  %v355_v30 = vpack.c.bf16 %v328_v25, %v327_v24  ;;  %v329_v32 = vld [vmem:[%s3160_s23 + $0x50] sm:$0xff]  ;;  %667 = vst.msk [vmem:[#allocation2] sm:$0x1] %vm666_vm2, %v2991_v50  ;;  %vm1606_vm5 = vcmask 195584  }
  0x42   : > { %v363_v31 = vpack.c.bf16 %v344_v27, %v343_v26  ;;  %v330_v33 = vld [vmem:[%s3160_s23 + $0x58] sm:$0xff]  ;;  %v345_v34 = vld [vmem:[%s3160_s23 + $0xd0] sm:$0xff]  ;;  %v331_v36 = vld [vmem:[%s3160_s23 + $0x60] sm:$0xff]  ;;  %668 = vst.msk [vmem:[#allocation2 + $0x18] sm:$0x1] %vm666_vm2, %v2991_v50  ;;  %vm1704_vm6 = vcmask 392192  }
  0x43   : > { %2648 = vmatmul.mubr.msk.bf16.vlgmr.msra.gmra.mrb[0].mxu0 %vm390_vm0, %v352_v14  ;;  %2664 = vmatmul.mubr.msk.bf16.vlgmr.msra.gmra.mrb[0].mxu1 %vm390_vm0, %v360_v15  ;;  %v346_v35 = vld [vmem:[%s3160_s23 + $0xd8] sm:$0xff]  ;;  %v332_v37 = vld [vmem:[%s3160_s23 + $0x68] sm:$0xff]  ;;  %v347_v38 = vld [vmem:[%s3160_s23 + $0xe0] sm:$0xff]  ;;  %v356_v40 = vpack.c.bf16 %v330_v33, %v329_v32  ;;  %669 = vst.msk [vmem:[#allocation2 + $0x30] sm:$0x1] %vm666_vm2, %v2991_v50  ;;  %vm1671_vm7 = vcmask 326656  }
  0x44   : > { %2651 = vmatprep.mubr.msk.bf16.mxu0 %vm390_vm0, %v353_v18  ;;  %2667 = vmatprep.mubr.msk.bf16.mxu1 %vm390_vm0, %v361_v19  ;;  %v348_v39 = vld [vmem:[%s3160_s23 + $0xe8] sm:$0xff]  ;;  %v364_v41 = vpack.c.bf16 %v346_v35, %v345_v34  ;;  %v357_v42 = vpack.c.bf16 %v332_v37, %v331_v36  ;;  %v333_v44 = vld [vmem:[%s3160_s23 + $0x70] sm:$0xff]  ;;  %v334_v45 = vld [vmem:[%s3160_s23 + $0x78] sm:$0xff]  ;;  %670 = vst.msk [vmem:[#allocation2 + $0x48] sm:$0x1] %vm666_vm2, %v2991_v50  ;;  %vm1737_vm8 = vcmask 457728  }
  0x45   : > { %v365_v43 = vpack.c.bf16 %v348_v39, %v347_v38  ;;  %v349_v46 = vld [vmem:[%s3160_s23 + $0xf0] sm:$0xff]  ;;  %v350_v47 = vld [vmem:[%s3160_s23 + $0xf8] sm:$0xff]  ;;  %v358_v48 = vpack.c.bf16 %v334_v45, %v333_v44  ;;  %671 = vst.msk [vmem:[#allocation2 + $0x60] sm:$0x1] %vm666_vm2, %v2991_v50  ;;  %672 = vst.msk [vmem:[#allocation2 + $0x78] sm:$0x1] %vm666_vm2, %v2991_v50 }
  0x46   : > { %v366_v49 = vpack.c.bf16 %v350_v47, %v349_v46  ;;  %673 = vst.msk [vmem:[#allocation2 + $0x90] sm:$0x1] %vm666_vm2, %v2991_v50  ;;  %674 = vst.msk [vmem:[#allocation2 + $0xa8] sm:$0x1] %vm666_vm2, %v2991_v50  ;;  %v756_v51 = vld [vmem:[#allocation2 + $0x1] sm:$0xff]  ;;  %v757_v52 = vld [vmem:[#allocation2 + $0x9] sm:$0xff] }
  0x47   : > { %675 = vst.msk [vmem:[#allocation2 + $0xc0] sm:$0x1] %vm666_vm2, %v2991_v50  ;;  %676 = vst.msk [vmem:[#allocation2 + $0xd8] sm:$0x1] %vm666_vm2, %v2991_v50  ;;  %v804_v53 = vld [vmem:[#allocation2 + $0x2] sm:$0xff]  ;;  %v788_v54 = vpack.c.bf16 %v757_v52, %v756_v51  ;;  %v805_v55 = vld [vmem:[#allocation2 + $0xa] sm:$0xff] }
  0x48   : > { %677 = vst.msk [vmem:[#allocation2 + $0xf0] sm:$0x1] %vm666_vm2, %v2991_v50  ;;  %678 = vst.msk [vmem:[#allocation2 + $0x108] sm:$0x1] %vm666_vm2, %v2991_v50  ;;  %v836_v56 = vpack.c.bf16 %v805_v55, %v804_v53  ;;  %v3265_v57 = vld [vmem:[%s4104_s4] ss:$0 sm:$0xff] }
  0x49   : > { %679 = vst.msk [vmem:[#allocation2 + $0x120] sm:$0x1] %vm666_vm2, %v2991_v50  ;;  %680 = vst.msk [vmem:[#allocation2 + $0x138] sm:$0x1] %vm666_vm2, %v2991_v50  ;;  %1157 = vrot.lane.b32.xlu0 %v788_v54, %s2992_s13  ;;  %vm1770_vm9 = vcmask 523264   ;;  %vm1846_vm10 = vcmask 588800  }
  0x4a   : > { %681 = vst.msk [vmem:[#allocation2 + $0x150] sm:$0x1] %vm666_vm2, %v2991_v50  ;;  %682 = vst.msk [vmem:[#allocation2 + $0x168] sm:$0x1] %vm666_vm2, %v2991_v50  ;;  %1205 = vrot.lane.b32.xlu1 %v836_v56, %s2993_s18  ;;  %s2586_s12 = sshll.u32 %s2978_s27, 12  ;;  %s2409_s27 = scalar_lea.sflag [#allocation5], %s3154_s20 }
  0x4b   : > { %2652 = vmatmul.mubr.msk.bf16.gmra.mrb[4].mxu0 %vm390_vm0, %v354_v28  ;;  %2668 = vmatmul.mubr.msk.bf16.gmra.mrb[4].mxu1 %vm390_vm0, %v362_v29  ;;  %683 = vst.msk [vmem:[#allocation2 + $0x180] sm:$0x1] %vm666_vm2, %v2991_v50  ;;  %684 = vst.msk [vmem:[#allocation2 + $0x198] sm:$0x1] %vm666_vm2, %v2991_v50  ;;  %p4120_p9 = scmp.ne.s32.totalorder %s4114_s14, 0 }
  0x4c   : > { %2655 = vmatprep.mubr.msk.bf16.mxu0 %vm390_vm0, %v355_v30  ;;  %2671 = vmatprep.mubr.msk.bf16.mxu1 %vm390_vm0, %v363_v31  ;;  %686 = vst.msk [vmem:[#allocation2 + $0x29] sm:$0x1] %vm666_vm2, %v2991_v50  ;;  %687 = vst.msk [vmem:[#allocation2 + $0x41] sm:$0x1] %vm666_vm2, %v2991_v50 }
  0x4d   : > { %688 = vst.msk [vmem:[#allocation2 + $0x59] sm:$0x1] %vm666_vm2, %v2991_v50  ;;  %689 = vst.msk [vmem:[#allocation2 + $0x71] sm:$0x1] %vm666_vm2, %v2991_v50 }
  0x4e   : > { %690 = vst.msk [vmem:[#allocation2 + $0x89] sm:$0x1] %vm666_vm2, %v2991_v50  ;;  %691 = vst.msk [vmem:[#allocation2 + $0xa1] sm:$0x1] %vm666_vm2, %v2991_v50 }
  0x4f   : > { %692 = vst.msk [vmem:[#allocation2 + $0xb9] sm:$0x1] %vm666_vm2, %v2991_v50  ;;  %693 = vst.msk [vmem:[#allocation2 + $0xd1] sm:$0x1] %vm666_vm2, %v2991_v50 }
  0x50   : > { %694 = vst.msk [vmem:[#allocation2 + $0xe9] sm:$0x1] %vm666_vm2, %v2991_v50  ;;  %695 = vst.msk [vmem:[#allocation2 + $0x101] sm:$0x1] %vm666_vm2, %v2991_v50 }
  0x51   : > { %696 = vst.msk [vmem:[#allocation2 + $0x119] sm:$0x1] %vm666_vm2, %v2991_v50  ;;  %697 = vst.msk [vmem:[#allocation2 + $0x131] sm:$0x1] %vm666_vm2, %v2991_v50 }
  0x52   : > { %698 = vst.msk [vmem:[#allocation2 + $0x149] sm:$0x1] %vm666_vm2, %v2991_v50  ;;  %699 = vst.msk [vmem:[#allocation2 + $0x161] sm:$0x1] %vm666_vm2, %v2991_v50 }
  0x53   : > { %2656 = vmatmul.mubr.msk.bf16.gmra.mrb[8].mxu0 %vm390_vm0, %v356_v40  ;;  %2672 = vmatmul.mubr.msk.bf16.gmra.mrb[8].mxu1 %vm390_vm0, %v364_v41  ;;  %700 = vst.msk [vmem:[#allocation2 + $0x179] sm:$0x1] %vm666_vm2, %v2991_v50  ;;  %701 = vst.msk [vmem:[#allocation2 + $0x191] sm:$0x1] %vm666_vm2, %v2991_v50 }
  0x54   : > { %2659 = vmatprep.mubr.msk.bf16.mxu0 %vm390_vm0, %v357_v42  ;;  %2675 = vmatprep.mubr.msk.bf16.mxu1 %vm390_vm0, %v365_v43  ;;  %702 = vst.msk [vmem:[#allocation2 + $0x1a9] sm:$0x1] %vm666_vm2, %v2991_v50 }
  0x5b   : > { %2660 = vmatmul.mubr.msk.bf16.gmra.mrb[12].mxu0 %vm390_vm0, %v358_v48  ;;  %2676 = vmatmul.mubr.msk.bf16.gmra.mrb[12].mxu1 %vm390_vm0, %v366_v49 }
 0x116   : > { %v2649_v58 = vpop.f32.mrb[0].mxu0  ;;  %v2665_v59 = vpop.f32.mrb[0].mxu1 }
 0x117   : > { %v482_v60 = vadd.f32 %v2649_v58, %v3265_v57  ;;  %v473_v61 = vpop.f32.mrb[1].mxu0  ;;  %v546_v62 = vadd.f32 %v2665_v59, %v3265_v57  ;;  %v537_v63 = vpop.f32.mrb[1].mxu1 }
 0x118   : > { %v474_v0 = vadd.f32 %v3265_v57, %v473_v61  ;;  %v2650_v1 = vpop.f32.mrb[2].mxu0  ;;  %v538_v2 = vadd.f32 %v3265_v57, %v537_v63  ;;  %v2666_v3 = vpop.f32.mrb[2].mxu1 }
 0x119   : > { %v602_v4 = vmax.f32 %v482_v60, 0.0  ;;  %v485_v5 = vadd.f32 %v2650_v1, %v3265_v57  ;;  %v476_v6 = vpop.f32.mrb[3].mxu0  ;;  %v618_v7 = vmax.f32 %v546_v62, 0.0  ;;  %v549_v8 = vadd.f32 %v2666_v3, %v3265_v57  ;;  %v540_v9 = vpop.f32.mrb[3].mxu1 }
 0x11a   : > { %v600_v10 = vmax.f32 %v474_v0, 0.0  ;;  %v477_v11 = vadd.f32 %v3265_v57, %v476_v6  ;;  %v616_v12 = vmax.f32 %v538_v2, 0.0  ;;  %v541_v13 = vadd.f32 %v3265_v57, %v540_v9 }
 0x11b   : > { %636 = vst.msk [vmem:[#allocation2 + $0x31] sm:$0xff] %vm633_vm1, %v602_v4  ;;  %v603_v14 = vmax.f32 %v485_v5, 0.0  ;;  %652 = vst.msk [vmem:[#allocation2 + $0xf1] sm:$0xff] %vm633_vm1, %v618_v7  ;;  %v619_v15 = vmax.f32 %v549_v8, 0.0 }
 0x11c   : > { %634 = vst.msk [vmem:[#allocation2 + $0x19] sm:$0xff] %vm633_vm1, %v600_v10  ;;  %v601_v16 = vmax.f32 %v477_v11, 0.0  ;;  %650 = vst.msk [vmem:[#allocation2 + $0xd9] sm:$0xff] %vm633_vm1, %v616_v12  ;;  %v617_v17 = vmax.f32 %v541_v13, 0.0 }
 0x11d   : > { %637 = vst.msk [vmem:[#allocation2 + $0x39] sm:$0xff] %vm633_vm1, %v603_v14  ;;  %653 = vst.msk [vmem:[#allocation2 + $0xf9] sm:$0xff] %vm633_vm1, %v619_v15 }
 0x11e   : > { %635 = vst.msk [vmem:[#allocation2 + $0x21] sm:$0xff] %vm633_vm1, %v601_v16  ;;  %651 = vst.msk [vmem:[#allocation2 + $0xe1] sm:$0xff] %vm633_vm1, %v617_v17  ;;  %v2653_v18 = vpop.f32.mrb[4].mxu0  ;;  %v2669_v19 = vpop.f32.mrb[4].mxu1 }
 0x11f   : > { %v498_v20 = vadd.f32 %v2653_v18, %v3265_v57  ;;  %v489_v21 = vpop.f32.mrb[5].mxu0  ;;  %v562_v22 = vadd.f32 %v2669_v19, %v3265_v57  ;;  %v553_v23 = vpop.f32.mrb[5].mxu1 }
 0x120   : > { %v490_v24 = vadd.f32 %v3265_v57, %v489_v21  ;;  %v2654_v25 = vpop.f32.mrb[6].mxu0  ;;  %v554_v26 = vadd.f32 %v3265_v57, %v553_v23  ;;  %v2670_v27 = vpop.f32.mrb[6].mxu1 }
 0x121   : > { %v606_v28 = vmax.f32 %v498_v20, 0.0  ;;  %v501_v29 = vadd.f32 %v2654_v25, %v3265_v57  ;;  %v492_v30 = vpop.f32.mrb[7].mxu0  ;;  %v622_v31 = vmax.f32 %v562_v22, 0.0  ;;  %v565_v32 = vadd.f32 %v2670_v27, %v3265_v57  ;;  %v556_v33 = vpop.f32.mrb[7].mxu1 }
 0x122   : > { %v604_v34 = vmax.f32 %v490_v24, 0.0  ;;  %v493_v35 = vadd.f32 %v3265_v57, %v492_v30  ;;  %v620_v36 = vmax.f32 %v554_v26, 0.0  ;;  %v557_v37 = vadd.f32 %v3265_v57, %v556_v33  ;;  %v997_v40 = vld [vmem:[#allocation2 + $0x30] sm:$0xff] }
 0x123   : > { %640 = vst.msk [vmem:[#allocation2 + $0x61] sm:$0xff] %vm633_vm1, %v606_v28  ;;  %v607_v38 = vmax.f32 %v501_v29, 0.0  ;;  %656 = vst.msk [vmem:[#allocation2 + $0x121] sm:$0xff] %vm633_vm1, %v622_v31  ;;  %v623_v39 = vmax.f32 %v565_v32, 0.0  ;;  %v1045_v52 = vld [vmem:[#allocation2 + $0x31] sm:$0xff]  ;;  %v758_v25 = vld [vmem:[#allocation2 + $0x19] sm:$0xff] }
 0x124   : > { %v998_v41 = vld [vmem:[#allocation2 + $0x38] sm:$0xff]  ;;  %638 = vst.msk [vmem:[#allocation2 + $0x49] sm:$0xff] %vm633_vm1, %v604_v34  ;;  %v605_v42 = vmax.f32 %v493_v35, 0.0  ;;  %654 = vst.msk [vmem:[#allocation2 + $0x109] sm:$0xff] %vm633_vm1, %v620_v36  ;;  %v621_v43 = vmax.f32 %v557_v37, 0.0  ;;  %v1013_v12 = vld [vmem:[#allocation2 + $0xf0] sm:$0xff] }
 0x125   : > { %v3295_v44 = vpack.c.bf16 %v998_v41, %v997_v40  ;;  %641 = vst.msk [vmem:[#allocation2 + $0x69] sm:$0xff] %vm633_vm1, %v607_v38  ;;  %657 = vst.msk [vmem:[#allocation2 + $0x129] sm:$0xff] %vm633_vm1, %v623_v39  ;;  %v1046_v45 = vld [vmem:[#allocation2 + $0x39] sm:$0xff]  ;;  %v1061_v15 = vld [vmem:[#allocation2 + $0xf1] sm:$0xff] }
 0x126   : > { %639 = vst.msk [vmem:[#allocation2 + $0x51] sm:$0xff] %vm633_vm1, %v605_v42  ;;  %655 = vst.msk [vmem:[#allocation2 + $0x111] sm:$0xff] %vm633_vm1, %v621_v43  ;;  %v2657_v46 = vpop.f32.mrb[8].mxu0  ;;  %v2673_v47 = vpop.f32.mrb[8].mxu1  ;;  %v1077_v56 = vpack.c.bf16 %v1046_v45, %v1045_v52  ;;  %v1093_v62 = vld [vmem:[#allocation2 + $0x32] sm:$0xff]  ;;  %v1094_v63 = vld [vmem:[#allocation2 + $0x3a] sm:$0xff] }
 0x127   : > { %1397 = vrot.lane.b32.xlu0 %v3295_v44, %s2994_s11  ;;  %1255 = vrot.lane.b32.xlu1 %v3295_v44, %s4110_s17  ;;  %v514_v48 = vadd.f32 %v2657_v46, %v3265_v57  ;;  %v505_v49 = vpop.f32.mrb[9].mxu0  ;;  %v578_v50 = vadd.f32 %v2673_v47, %v3265_v57  ;;  %v569_v51 = vpop.f32.mrb[9].mxu1  ;;  %v1125_v8 = vpack.c.bf16 %v1094_v63, %v1093_v62  ;;  %v1014_v13 = vld [vmem:[#allocation2 + $0xf8] sm:$0xff]  ;;  %v807_v22 = vld [vmem:[#allocation2 + $0x22] sm:$0xff] }
 0x128   : > { %v506_v53 = vadd.f32 %v3265_v57, %v505_v49  ;;  %v2658_v54 = vpop.f32.mrb[10].mxu0  ;;  %v2674_v55 = vpop.f32.mrb[10].mxu1  ;;  %v570_v4 = vadd.f32 %v3265_v57, %v569_v51  ;;  %v3327_v14 = vpack.c.bf16 %v1014_v13, %v1013_v12  ;;  %v1062_v16 = vld [vmem:[#allocation2 + $0xf9] sm:$0xff]  ;;  %v759_v23 = vld [vmem:[#allocation2 + $0x21] sm:$0xff] }
 0x129   : > { %v610_v58 = vmax.f32 %v514_v48, 0.0  ;;  %v517_v59 = vadd.f32 %v2658_v54, %v3265_v57  ;;  %v508_v60 = vpop.f32.mrb[11].mxu0  ;;  %v626_v61 = vmax.f32 %v578_v50, 0.0  ;;  %v572_v2 = vpop.f32.mrb[11].mxu1  ;;  %v581_v5 = vadd.f32 %v2674_v55, %v3265_v57  ;;  %v1109_v18 = vld [vmem:[#allocation2 + $0xf2] sm:$0xff]  ;;  %v1110_v19 = vld [vmem:[#allocation2 + $0xfa] sm:$0xff] }
 0x12a   : > { %v608_v0 = vmax.f32 %v506_v53, 0.0  ;;  %v509_v1 = vadd.f32 %v3265_v57, %v508_v60  ;;  %v573_v6 = vadd.f32 %v3265_v57, %v572_v2  ;;  %v624_v9 = vmax.f32 %v570_v4, 0.0  ;;  %v806_v21 = vld [vmem:[#allocation2 + $0x1a] sm:$0xff]  ;;  %v823_v50 = vld [vmem:[#allocation2 + $0xe2] sm:$0xff] }
 0x12b   : > { %1445 = vrot.lane.b32.xlu0 %v1077_v56, %s2996_s22  ;;  %1303 = vrot.lane.b32.xlu1 %v1077_v56, %s2997_s30  ;;  %644 = vst.msk [vmem:[#allocation2 + $0x91] sm:$0xff] %vm633_vm1, %v610_v58  ;;  %v611_v3 = vmax.f32 %v517_v59, 0.0  ;;  %660 = vst.msk [vmem:[#allocation2 + $0x151] sm:$0xff] %vm633_vm1, %v626_v61  ;;  %v627_v10 = vmax.f32 %v581_v5, 0.0  ;;  %v1085_v17 = vpack.c.bf16 %v1062_v16, %v1061_v15  ;;  %v1011_v31 = vld [vmem:[#allocation2 + $0xd8] sm:$0xff]  ;;  %v1012_v32 = vld [vmem:[#allocation2 + $0xe0] sm:$0xff] }
 0x12c   : > { %642 = vst.msk [vmem:[#allocation2 + $0x79] sm:$0xff] %vm633_vm1, %v608_v0  ;;  %v609_v7 = vmax.f32 %v509_v1, 0.0  ;;  %v625_v11 = vmax.f32 %v573_v6, 0.0  ;;  %658 = vst.msk [vmem:[#allocation2 + $0x139] sm:$0xff] %vm633_vm1, %v624_v9  ;;  %v1133_v20 = vpack.c.bf16 %v1110_v19, %v1109_v18  ;;  %v837_v28 = vpack.c.bf16 %v807_v22, %v806_v21  ;;  %v853_v33 = vld [vmem:[#allocation2 + $0x20] sm:$0xff]  ;;  %v852_v37 = vld [vmem:[#allocation2 + $0x18] sm:$0xff] }
 0x12d   : > { %645 = vst.msk [vmem:[#allocation2 + $0x99] sm:$0xff] %vm633_vm1, %v611_v3  ;;  %661 = vst.msk [vmem:[#allocation2 + $0x159] sm:$0xff] %vm633_vm1, %v627_v10  ;;  %v789_v29 = vpack.c.bf16 %v759_v23, %v758_v25  ;;  %v3345_v40 = vpack.c.bf16 %v1012_v32, %v1011_v31  ;;  %v3347_v41 = vpack.c.bf16 %v853_v33, %v852_v37  ;;  %v1059_v43 = vld [vmem:[#allocation2 + $0xd9] sm:$0xff]  ;;  %v1060_v45 = vld [vmem:[#allocation2 + $0xe1] sm:$0xff] }
 0x12e   : > { %643 = vst.msk [vmem:[#allocation2 + $0x81] sm:$0xff] %vm633_vm1, %v609_v7  ;;  %659 = vst.msk [vmem:[#allocation2 + $0x141] sm:$0xff] %vm633_vm1, %v625_v11  ;;  %v2661_v24 = vpop.f32.mrb[12].mxu0  ;;  %v1084_v48 = vpack.c.bf16 %v1060_v45, %v1059_v43  ;;  %v822_v49 = vld [vmem:[#allocation2 + $0xda] sm:$0xff]  ;;  %v859_v52 = vld [vmem:[#allocation2 + $0x68] sm:$0xff]  ;;  %v2677_v2 = vpop.f32.mrb[12].mxu1 }
 0x12f   : > { %1493 = vrot.lane.b32.xlu0 %v1125_v8, %s2998_s8  ;;  %1351 = vrot.lane.b32.xlu1 %v1125_v8, %s2999_s10  ;;  %v530_v26 = vadd.f32 %v2661_v24, %v3265_v57  ;;  %v521_v27 = vpop.f32.mrb[13].mxu0  ;;  %v858_v51 = vld [vmem:[#allocation2 + $0x60] sm:$0xff]  ;;  %v845_v53 = vpack.c.bf16 %v823_v50, %v822_v49  ;;  %v955_v60 = vld [vmem:[#allocation2 + $0x6a] sm:$0xff]  ;;  %v594_v3 = vadd.f32 %v2677_v2, %v3265_v57  ;;  %v585_v4 = vpop.f32.mrb[13].mxu1  ;;  %v2840_v22 = vld [vmem:[%s4102_s2 + $0x18] sm:$0xff]  }
 0x130   : > { %v522_v30 = vadd.f32 %v3265_v57, %v521_v27  ;;  %v2662_v36 = vpop.f32.mrb[14].mxu0  ;;  %v3363_v54 = vpack.c.bf16 %v859_v52, %v858_v51  ;;  %v906_v55 = vld [vmem:[#allocation2 + $0x61] sm:$0xff]  ;;  %v586_v5 = vadd.f32 %v3265_v57, %v585_v4  ;;  %v923_v7 = vld [vmem:[#allocation2 + $0x129] sm:$0xff]  ;;  %v2678_v9 = vpop.f32.mrb[14].mxu1  ;;  %v2841_v25 = vld [vmem:[%s4102_s2 + $0x20] ss:$0 sps:$4 sm:$0xff]  }
 0x131   : > { %v614_v34 = vmax.f32 %v530_v26, 0.0  ;;  %v533_v38 = vadd.f32 %v2662_v36, %v3265_v57  ;;  %v524_v39 = vpop.f32.mrb[15].mxu0  ;;  %v954_v59 = vld [vmem:[#allocation2 + $0x62] sm:$0xff]  ;;  %v597_v12 = vadd.f32 %v2678_v9, %v3265_v57  ;;  %v588_v13 = vpop.f32.mrb[15].mxu1  ;;  %v971_v19 = vld [vmem:[#allocation2 + $0x12a] sm:$0xff]  ;;  %v1881_v26 = vsel %vm1879_vm3, %v2841_v25, 0 }
 0x132   : > { %v612_v35 = vmax.f32 %v522_v30, 0.0  ;;  %v525_v42 = vadd.f32 %v3265_v57, %v524_v39  ;;  %v983_v61 = vpack.c.bf16 %v955_v60, %v954_v59  ;;  %v874_v62 = vld [vmem:[#allocation2 + $0x120] sm:$0xff]  ;;  %v875_v63 = vld [vmem:[#allocation2 + $0x128] sm:$0xff]  ;;  %v628_v11 = vmax.f32 %v586_v5, 0.0  ;;  %v2839_v21 = vld [vmem:[%s4102_s2 + $0x10] sm:$0xff]   ;;  %v3434_v45 = vpop.permute.xlu0 %1157 }
 0x133   : > { %1209 = vrot.lane.b32.xlu0 %v1125_v8, %s2993_s18  ;;  %1161 = vrot.lane.b32.xlu1 %v1077_v56, %s2992_s13  ;;  %648 = vst.msk [vmem:[#allocation2 + $0xc1] sm:$0xff] %vm633_vm1, %v614_v34  ;;  %v615_v46 = vmax.f32 %v533_v38, 0.0  ;;  %v907_v56 = vld [vmem:[#allocation2 + $0x69] sm:$0xff]  ;;  %v2837_v0 = vld [vmem:[%s4102_s2] sm:$0xff]   ;;  %v3379_v1 = vpack.c.bf16 %v875_v63, %v874_v62  ;;  %v630_v8 = vmax.f32 %v594_v3, 0.0  ;;  %v589_v15 = vadd.f32 %v3265_v57, %v588_v13  ;;  %v811_v32 = vld [vmem:[#allocation2 + $0x52] sm:$0xff] }
 0x134   : > { %646 = vst.msk [vmem:[#allocation2 + $0xa9] sm:$0xff] %vm633_vm1, %v612_v35  ;;  %v613_v47 = vmax.f32 %v525_v42, 0.0  ;;  %v935_v58 = vpack.c.bf16 %v907_v56, %v906_v55  ;;  %2679 = vmatprep.subr.bf16.mxu1 %v2837_v0  ;;  %v922_v6 = vld [vmem:[#allocation2 + $0x121] sm:$0xff]  ;;  %662 = vst.msk [vmem:[#allocation2 + $0x169] sm:$0xff] %vm633_vm1, %v628_v11  ;;  %v1000_v24 = vld [vmem:[#allocation2 + $0x50] sm:$0xff] }
 0x135   : > { %649 = vst.msk [vmem:[#allocation2 + $0xc9] sm:$0xff] %vm633_vm1, %v615_v46  ;;  %2680 = vmatpush3.bf16.msra.mxu1 %v2837_v0  ;;  %v2838_v10 = vld [vmem:[%s4102_s2 + $0x8] sm:$0xff]   ;;  %664 = vst.msk [vmem:[#allocation2 + $0x181] sm:$0xff] %vm633_vm1, %v630_v8  ;;  %v943_v16 = vpack.c.bf16 %v923_v7, %v922_v6  ;;  %v1016_v35 = vld [vmem:[#allocation2 + $0x110] sm:$0xff]  ;;  %v3436_v46 = vpop.permute.xlu1 %1205 }
 0x136   : > { %647 = vst.msk [vmem:[#allocation2 + $0xb1] sm:$0xff] %vm633_vm1, %v613_v47  ;;  %2681 = vmatprep.subr.bf16.mxu1 %v2838_v10  ;;  %v970_v18 = vld [vmem:[#allocation2 + $0x122] sm:$0xff]  ;;  %v810_v31 = vld [vmem:[#allocation2 + $0x4a] sm:$0xff]  ;;  %v827_v43 = vld [vmem:[#allocation2 + $0x112] sm:$0xff] }
 0x137   : > { %1413 = vrot.lane.b32.xlu0 %v3327_v14, %s2994_s11  ;;  %1271 = vrot.lane.b32.xlu1 %v3327_v14, %s4110_s17  ;;  %v991_v57 = vpack.c.bf16 %v971_v19, %v970_v18  ;;  %v999_v23 = vld [vmem:[#allocation2 + $0x48] sm:$0xff]  ;;  %v839_v33 = vpack.c.bf16 %v811_v32, %v810_v31  ;;  %v1064_v38 = vld [vmem:[#allocation2 + $0x111] sm:$0xff]  ;;  %v911_v55 = vld [vmem:[#allocation2 + $0x99] sm:$0xff] }
 0x138   : > { %v3413_v27 = vpack.c.bf16 %v1000_v24, %v999_v23  ;;  %v1015_v34 = vld [vmem:[#allocation2 + $0x108] sm:$0xff]  ;;  %v862_v47 = vld [vmem:[#allocation2 + $0x90] sm:$0xff]  ;;  %v879_v3 = vld [vmem:[#allocation2 + $0x158] sm:$0xff] }
 0x139   : > { %2682 = vmatpush3.bf16.msra.mxu1 %v2838_v10  ;;  %v3424_v36 = vpack.c.bf16 %v1016_v35, %v1015_v34  ;;  %v1063_v37 = vld [vmem:[#allocation2 + $0x109] sm:$0xff]  ;;  %v958_v60 = vld [vmem:[#allocation2 + $0x92] sm:$0xff]  ;;  %v1099_v32 = vld [vmem:[#allocation2 + $0x7a] sm:$0xff] }
 0x13a   : > { %2683 = vmatprep.subr.bf16.mxu1 %v2839_v21  ;;  %v1086_v39 = vpack.c.bf16 %v1064_v38, %v1063_v37  ;;  %v826_v42 = vld [vmem:[#allocation2 + $0x10a] sm:$0xff]  ;;  %v927_v10 = vld [vmem:[#allocation2 + $0x159] sm:$0xff] }
 0x13b   : > { %1461 = vrot.lane.b32.xlu0 %v1085_v17, %s2996_s22  ;;  %1319 = vrot.lane.b32.xlu1 %v1085_v17, %s2997_s30  ;;  %v847_v49 = vpack.c.bf16 %v827_v43, %v826_v42  ;;  %v878_v2 = vld [vmem:[#allocation2 + $0x150] sm:$0xff]  ;;  %v1051_v24 = vld [vmem:[#allocation2 + $0x79] sm:$0xff] }
 0x13c   : > { %v897_v6 = vpack.c.bf16 %v879_v3, %v878_v2  ;;  %v926_v9 = vld [vmem:[#allocation2 + $0x151] sm:$0xff] }
 0x13d   : > { %2684 = vmatpush3.bf16.msra.mxu1 %v2839_v21  ;;  %v3479_v13 = vpack.c.bf16 %v927_v10, %v926_v9  ;;  %v1004_v21 = vld [vmem:[#allocation2 + $0x80] sm:$0xff] }
 0x13e   : > { %2685 = vmatprep.subr.bf16.mxu1 %v2840_v22 }
 0x13f   : > { %1509 = vrot.lane.b32.xlu0 %v1133_v20, %s2998_s8  ;;  %1367 = vrot.lane.b32.xlu1 %v1133_v20, %s2999_s10 }
 0x141   : > { %2686 = vmatpush3.bf16.msra.mxu1 %v2840_v22 }
 0x142   : > { %2759 = vmatprep.subr.msk.bf16.mxu1 %vm1879_vm3, %v2841_v25  ;;  %v1052_v25 = vld [vmem:[#allocation2 + $0x81] sm:$0xff] }
 0x143   : > { %1225 = vrot.lane.b32.xlu0 %v1133_v20, %s2993_s18  ;;  %1177 = vrot.lane.b32.xlu1 %v1085_v17, %s2992_s13  ;;  %v631_v17 = vmax.f32 %v597_v12, 0.0  ;;  %v629_v20 = vmax.f32 %v589_v15, 0.0  ;;  %v974_v15 = vld [vmem:[#allocation2 + $0x152] sm:$0xff]  ;;  %v1080_v31 = vpack.c.bf16 %v1052_v25, %v1051_v24  ;;  %v866_v24 = vld [vmem:[#allocation2 + $0xc0] sm:$0xff] }
 0x145   : > { %665 = vst.msk [vmem:[#allocation2 + $0x189] sm:$0xff] %vm633_vm1, %v631_v17  ;;  %663 = vst.msk [vmem:[#allocation2 + $0x171] sm:$0xff] %vm633_vm1, %v629_v20  ;;  %2688 = vmatpush3.bf16.msra.mxu1 %v1881_v26  ;;  %v1003_v20 = vld [vmem:[#allocation2 + $0x78] sm:$0xff]  ;;  %v708_v26 = vld [vmem:[#allocation2] sm:$0xff] }
 0x146   : > { %v3497_v23 = vpack.c.bf16 %v1004_v21, %v1003_v20 }
 0x147   : > { %1207 = vrot.lane.b32.xlu1 %v837_v28, %s2993_s18  ;;  %1159 = vrot.lane.b32.xlu0 %v789_v29, %s2992_s13 }
 0x14b   : > { %1411 = vrot.lane.b32.xlu1 %v3345_v40, %s2994_s11  ;;  %1253 = vrot.lane.b32.xlu0 %v3347_v41, %s4110_s17 }
 0x14f   : > { %1459 = vrot.lane.b32.xlu1 %v1084_v48, %s2996_s22  ;;  %1301 = vrot.lane.b32.xlu0 %v789_v29, %s2997_s30  ;;  %v1048_v29 = vld [vmem:[#allocation2 + $0x51] sm:$0xff] }
 0x153   : > { %1175 = vrot.lane.b32.xlu1 %v1084_v48, %s2992_s13  ;;  %1349 = vrot.lane.b32.xlu0 %v837_v28, %s2999_s10  ;;  %v1047_v28 = vld [vmem:[#allocation2 + $0x49] sm:$0xff] }
 0x154   : > { %v1078_v30 = vpack.c.bf16 %v1048_v29, %v1047_v28  ;;  %v709_v28 = vld [vmem:[#allocation2 + $0x8] sm:$0xff] }
 0x155   : > { %v740_v34 = vpack.c.bf16 %v709_v28, %v708_v26 }
 0x157   : > { %1223 = vrot.lane.b32.xlu1 %v845_v53, %s2993_s18  ;;  %1507 = vrot.lane.b32.xlu0 %v845_v53, %s2998_s8 }
 0x15b   : > { %1259 = vrot.lane.b32.xlu1 %v3363_v54, %s4110_s17  ;;  %1269 = vrot.lane.b32.xlu0 %v3345_v40, %s4110_s17 }
 0x15f   : > { %1307 = vrot.lane.b32.xlu1 %v935_v58, %s2997_s30  ;;  %1317 = vrot.lane.b32.xlu0 %v1084_v48, %s2997_s30  ;;  %v863_v48 = vld [vmem:[#allocation2 + $0x98] sm:$0xff] }
 0x160   : > { %v3440_v50 = vpack.c.bf16 %v863_v48, %v862_v47  ;;  %v1019_v47 = vld [vmem:[#allocation2 + $0x138] sm:$0xff]  ;;  %v1020_v48 = vld [vmem:[#allocation2 + $0x140] sm:$0xff] }
 0x163   : > { %1355 = vrot.lane.b32.xlu1 %v983_v61, %s2999_s10  ;;  %1365 = vrot.lane.b32.xlu0 %v845_v53, %s2999_s10  ;;  %v910_v53 = vld [vmem:[#allocation2 + $0x91] sm:$0xff] }
 0x164   : > { %v937_v59 = vpack.c.bf16 %v911_v55, %v910_v53 }
 0x167   : > { %1165 = vrot.lane.b32.xlu1 %v935_v58, %s2992_s13  ;;  %1401 = vrot.lane.b32.xlu0 %v3363_v54, %s2994_s11 }
 0x16b   : > { %1275 = vrot.lane.b32.xlu1 %v3379_v1, %s4110_s17  ;;  %1449 = vrot.lane.b32.xlu0 %v935_v58, %s2996_s22  ;;  %s4042_s17 = scalar_lea.hbm %s4107_s7, %s2586_s12 }
 0x16f   : > { %1323 = vrot.lane.b32.xlu1 %v943_v16, %s2997_s30  ;;  %1497 = vrot.lane.b32.xlu0 %v983_v61, %s2998_s8 }
 0x173   : > { %1371 = vrot.lane.b32.xlu1 %v991_v57, %s2999_s10  ;;  %1213 = vrot.lane.b32.xlu0 %v983_v61, %s2993_s18  ;;  %v959_v61 = vld [vmem:[#allocation2 + $0x9a] sm:$0xff] }
 0x174   : > { %v985_v0 = vpack.c.bf16 %v959_v61, %v958_v60  ;;  %v3526_v60 = vpack.c.bf16 %v1020_v48, %v1019_v47  ;;  %v1067_v61 = vld [vmem:[#allocation2 + $0x139] sm:$0xff]  ;;  %v963_v47 = vld [vmem:[#allocation2 + $0xca] sm:$0xff] }
 0x177   : > { %1181 = vrot.lane.b32.xlu1 %v943_v16, %s2992_s13  ;;  %1417 = vrot.lane.b32.xlu0 %v3379_v1, %s2994_s11 }
 0x17b   : > { %1399 = vrot.lane.b32.xlu1 %v3413_v27, %s2994_s11  ;;  %1465 = vrot.lane.b32.xlu0 %v943_v16, %s2996_s22  ;;  %v975_v16 = vld [vmem:[#allocation2 + $0x15a] sm:$0xff] }
 0x17c   : > { %v3488_v19 = vpack.c.bf16 %v975_v16, %v974_v15  ;;  %v1116_v16 = vld [vmem:[#allocation2 + $0x142] sm:$0xff] }
 0x17f   : > { %1447 = vrot.lane.b32.xlu1 %v1078_v30, %s2996_s22  ;;  %1513 = vrot.lane.b32.xlu0 %v991_v57, %s2998_s8 }
 0x183   : > { %1163 = vrot.lane.b32.xlu1 %v1078_v30, %s2992_s13  ;;  %1229 = vrot.lane.b32.xlu0 %v991_v57, %s2993_s18 }
 0x187   : > { %1211 = vrot.lane.b32.xlu1 %v839_v33, %s2993_s18  ;;  %1495 = vrot.lane.b32.xlu0 %v839_v33, %s2998_s8 }
 0x18b   : > { %1415 = vrot.lane.b32.xlu1 %v3424_v36, %s2994_s11  ;;  %1257 = vrot.lane.b32.xlu0 %v3413_v27, %s4118_s21 }
 0x18f   : > { %1463 = vrot.lane.b32.xlu1 %v1086_v39, %s2996_s22  ;;  %1305 = vrot.lane.b32.xlu0 %v1078_v30, %s2997_s30 }
 0x193   : > { %1179 = vrot.lane.b32.xlu1 %v1086_v39, %s2992_s13  ;;  %1353 = vrot.lane.b32.xlu0 %v839_v33, %s2999_s10  ;;  %v1100_v33 = vld [vmem:[#allocation2 + $0x82] sm:$0xff] }
 0x194   : > { %v1128_v38 = vpack.c.bf16 %v1100_v33, %v1099_v32  ;;  %v914_v33 = vld [vmem:[#allocation2 + $0xc1] sm:$0xff] }
 0x197   : > { %1227 = vrot.lane.b32.xlu1 %v847_v49, %s2993_s18  ;;  %1511 = vrot.lane.b32.xlu0 %v847_v49, %s2998_s8 }
 0x199   : > { %v3442_v51 = vpop.permute.xlu0 %1397  ;;  %v3444_v52 = vpop.permute.xlu1 %1255 }
 0x19b   : > { %1263 = vrot.lane.b32.xlu1 %v3440_v50, %s4118_s21  ;;  %1273 = vrot.lane.b32.xlu0 %v3424_v36, %s4118_s21 }
 0x19d   : > { %v3450_v56 = vpop.permute.xlu0 %1445  ;;  %v3452_v58 = vpop.permute.xlu1 %1303 }
 0x19f   : > { %1311 = vrot.lane.b32.xlu1 %v937_v59, %s2997_s30  ;;  %1321 = vrot.lane.b32.xlu0 %v1086_v39, %s2997_s30  ;;  %v1527_v39 = vsel %vm633_vm1, %v740_v34, %v3434_v45  ;;  %v915_v34 = vld [vmem:[#allocation2 + $0xc9] sm:$0xff] }
 0x1a1   : > { %v3456_v62 = vpop.permute.xlu0 %1493  ;;  %v3458_v63 = vpop.permute.xlu1 %1351 }
 0x1a3   : > { %1359 = vrot.lane.b32.xlu1 %v985_v0, %s2999_s10  ;;  %1369 = vrot.lane.b32.xlu0 %v847_v49, %s2999_s10  ;;  %v1575_v49 = vsel %vm1573_vm4, %v1527_v39, %v3436_v46  ;;  %v939_v39 = vpack.c.bf16 %v915_v34, %v914_v33  ;;  %v1104_v33 = vld [vmem:[#allocation2 + $0xb2] sm:$0xff] }
 0x1a5   : > { %v3462_v4 = vpop.permute.xlu0 %1209  ;;  %v3464_v5 = vpop.permute.xlu1 %1161 }
 0x1a7   : > { %1169 = vrot.lane.b32.xlu1 %v937_v59, %s2992_s13  ;;  %1405 = vrot.lane.b32.xlu0 %v3440_v50, %s2994_s11 }
 0x1a9   : > { %v3469_v7 = vpop.permute.xlu0 %1413  ;;  %v3471_v8 = vpop.permute.xlu1 %1271 }
 0x1ab   : > { %1279 = vrot.lane.b32.xlu1 %v897_v6, %s4118_s21  ;;  %1453 = vrot.lane.b32.xlu0 %v937_v59, %s2996_s22 }
 0x1ad   : > { %v3475_v11 = vpop.permute.xlu0 %1461  ;;  %v3477_v12 = vpop.permute.xlu1 %1319 }
 0x1af   : > { %1327 = vrot.lane.b32.xlu1 %v3479_v13, %s2997_s30  ;;  %1501 = vrot.lane.b32.xlu0 %v985_v0, %s2998_s8 }
 0x1b1   : > { %v3484_v17 = vpop.permute.xlu0 %1509  ;;  %v3486_v18 = vpop.permute.xlu1 %1367 }
 0x1b3   : > { %1375 = vrot.lane.b32.xlu1 %v3488_v19, %s2999_s10  ;;  %1217 = vrot.lane.b32.xlu0 %v985_v0, %s2993_s18  ;;  %v1068_v0 = vld [vmem:[#allocation2 + $0x141] sm:$0xff] }
 0x1b4   : > { %v1088_v15 = vpack.c.bf16 %v1068_v0, %v1067_v61  ;;  %v1008_v61 = vld [vmem:[#allocation2 + $0xb0] sm:$0xff] }
 0x1b5   : > { %v3493_v57 = vpop.permute.xlu0 %1225  ;;  %v3495_v22 = vpop.permute.xlu1 %1177 }
 0x1b7   : > { %1403 = vrot.lane.b32.xlu1 %v3497_v23, %s2994_s11  ;;  %1421 = vrot.lane.b32.xlu0 %v897_v6, %s2994_s11 }
 0x1b9   : > { %v3502_v29 = vpop.permute.xlu1 %1207  ;;  %v3504_v30 = vpop.permute.xlu0 %1159 }
 0x1ba   : > { %v1530_v34 = vsel %vm633_vm1, %v3347_v41, %v3504_v30 }
 0x1bb   : > { %1451 = vrot.lane.b32.xlu1 %v1080_v31, %s2996_s22  ;;  %1469 = vrot.lane.b32.xlu0 %v3479_v13, %s2996_s22 }
 0x1bd   : > { %v3509_v35 = vpop.permute.xlu1 %1411  ;;  %v1254_v37 = vpop.permute.xlu0 %1253 }
 0x1be   : > { %v1608_v53 = vsel %vm1606_vm5, %v1575_v49, %v1254_v37 }
 0x1bf   : > { %1167 = vrot.lane.b32.xlu1 %v1080_v31, %s2992_s13  ;;  %1499 = vrot.lane.b32.xlu0 %v1128_v38, %s2998_s8 }
 0x1c1   : > { %v3515_v42 = vpop.permute.xlu1 %1459  ;;  %v1302_v43 = vpop.permute.xlu0 %1301 }
 0x1c2   : > { %v1640_v45 = vsel %vm390_vm0, %v1608_v53, %v1302_v43  ;;  %v962_v43 = vld [vmem:[#allocation2 + $0xc2] sm:$0xff] }
 0x1c3   : > { %1215 = vrot.lane.b32.xlu1 %v1128_v38, %s2993_s18  ;;  %1261 = vrot.lane.b32.xlu0 %v3497_v23, %s4118_s21  ;;  %v987_v53 = vpack.c.bf16 %v963_v47, %v962_v43  ;;  %v1577_v47 = vsel %vm1573_vm4, %v1530_v34, %v3502_v29  ;;  %v883_v29 = vld [vmem:[#allocation2 + $0x188] sm:$0xff] }
 0x1c5   : > { %v3524_v55 = vpop.permute.xlu1 %1175  ;;  %v1350_v59 = vpop.permute.xlu0 %1349 }
 0x1c6   : > { %v1673_v46 = vsel %vm1671_vm7, %v1640_v45, %v1350_v59 }
 0x1c7   : > { %v1706_v2 = vsel %vm1704_vm6, %v1673_v46, %v3442_v51  ;;  %1419 = vrot.lane.b32.xlu1 %v3526_v60, %s2994_s11  ;;  %1309 = vrot.lane.b32.xlu0 %v1080_v31, %s2997_s30  ;;  %v1115_v51 = vld [vmem:[#allocation2 + $0x13a] sm:$0xff]  ;;  %v1007_v46 = vld [vmem:[#allocation2 + $0xa8] sm:$0xff] }
 0x1c8   : > { %v1739_v3 = vsel %vm1737_vm8, %v1706_v2, %v3450_v56  ;;  %v1136_v56 = vpack.c.bf16 %v1116_v16, %v1115_v51  ;;  %v1055_v51 = vld [vmem:[#allocation2 + $0xa9] sm:$0xff]  ;;  %v1056_v16 = vld [vmem:[#allocation2 + $0xb1] sm:$0xff] }
 0x1c9   : > { %v3536_v6 = vpop.permute.xlu1 %1223  ;;  %v3538_v9 = vpop.permute.xlu0 %1507  ;;  %v1772_v10 = vsel %vm1770_vm9, %v1739_v3, %v3456_v62  ;;  %v867_v62 = vld [vmem:[#allocation2 + $0xc8] sm:$0xff] }
 0x1ca   : > { %2689 = vmatprep.mubr.msk.bf16.mxu1 %vm1846_vm10, %v1772_v10  ;;  %v3558_v28 = vpack.c.bf16 %v867_v62, %v866_v24  ;;  %v3588_v10 = vpack.c.bf16 %v1008_v61, %v1007_v46  ;;  %v1082_v62 = vpack.c.bf16 %v1056_v16, %v1055_v51  ;;  %v1610_v46 = vsel %vm1606_vm5, %v1577_v47, %v3444_v52 }
 0x1cb   : > { %1467 = vrot.lane.b32.xlu1 %v1088_v15, %s2996_s22  ;;  %1357 = vrot.lane.b32.xlu0 %v1128_v38, %s2999_s10  ;;  %v1642_v30 = vsel %vm390_vm0, %v1610_v46, %v3452_v58  ;;  %v1554_v52 = vsel %vm633_vm1, %v3345_v40, %v3524_v55  ;;  %v931_v46 = vld [vmem:[#allocation2 + $0x189] sm:$0xff] }
 0x1cc   : > { %v1675_v58 = vsel %vm1671_vm7, %v1642_v30, %v3458_v63 }
 0x1cd   : > { %v3545_v20 = vpop.permute.xlu1 %1259  ;;  %v3547_v21 = vpop.permute.xlu0 %1269 }
 0x1cf   : > { %1183 = vrot.lane.b32.xlu1 %v1088_v15, %s2992_s13  ;;  %1515 = vrot.lane.b32.xlu0 %v1136_v56, %s2998_s8 }
 0x1d1   : > { %v3551_v25 = vpop.permute.xlu1 %1307  ;;  %v3553_v26 = vpop.permute.xlu0 %1317 }
 0x1d3   : > { %1231 = vrot.lane.b32.xlu1 %v1136_v56, %s2993_s18  ;;  %1277 = vrot.lane.b32.xlu0 %v3526_v60, %s4118_s21 }
 0x1d5   : > { %v3560_v31 = vpop.permute.xlu1 %1355  ;;  %v3562_v32 = vpop.permute.xlu0 %1365 }
 0x1d7   : > { %1267 = vrot.lane.b32.xlu1 %v3558_v28, %s4118_s21  ;;  %1325 = vrot.lane.b32.xlu0 %v1088_v15, %s2997_s30 }
 0x1d9   : > { %v1166_v37 = vpop.permute.xlu1 %1165  ;;  %v3567_v38 = vpop.permute.xlu0 %1401 }
 0x1da   : > { %v1539_v0 = vsel %vm633_vm1, %v3363_v54, %v1166_v37  ;;  %v1103_v54 = vld [vmem:[#allocation2 + $0xaa] sm:$0xff] }
 0x1db   : > { %1315 = vrot.lane.b32.xlu1 %v939_v39, %s2997_s30  ;;  %1373 = vrot.lane.b32.xlu0 %v1136_v56, %s2999_s10  ;;  %v1130_v43 = vpack.c.bf16 %v1104_v33, %v1103_v54  ;;  %v1593_v54 = vsel %vm1573_vm4, %v1554_v52, %v3536_v6 }
 0x1dc   : > { %v1626_v6 = vsel %vm1606_vm5, %v1593_v54, %v3471_v8 }
 0x1dd   : > { %v3571_v48 = vpop.permute.xlu1 %1275  ;;  %v3573_v49 = vpop.permute.xlu0 %1449  ;;  %v1658_v8 = vsel %vm390_vm0, %v1626_v6, %v3477_v12 }
 0x1de   : > { %v1691_v12 = vsel %vm1671_vm7, %v1658_v8, %v3486_v18  ;;  %v1120_v8 = vld [vmem:[#allocation2 + $0x172] sm:$0xff] }
 0x1df   : > { %1363 = vrot.lane.b32.xlu1 %v987_v53, %s2999_s10  ;;  %1409 = vrot.lane.b32.xlu0 %v3558_v28, %s2994_s11 }
 0x1e1   : > { %v3578_v45 = vpop.permute.xlu1 %1323  ;;  %v3580_v59 = vpop.permute.xlu0 %1497 }
 0x1e3   : > { %1173 = vrot.lane.b32.xlu1 %v939_v39, %s2992_s13  ;;  %1457 = vrot.lane.b32.xlu0 %v939_v39, %s2996_s22 }
 0x1e5   : > { %v3586_v2 = vpop.permute.xlu1 %1371  ;;  %v1214_v3 = vpop.permute.xlu0 %1213 }
 0x1e6   : > { %v3591_v15 = vsel %vm1573_vm4, %v1539_v0, %v1214_v3 }
 0x1e7   : > { %1407 = vrot.lane.b32.xlu1 %v3588_v10, %s2994_s11  ;;  %1505 = vrot.lane.b32.xlu0 %v987_v53, %s2998_s8 }
 0x1e9   : > { %v1182_v56 = vpop.permute.xlu1 %1181  ;;  %v3596_v24 = vpop.permute.xlu0 %1417 }
 0x1ea   : > { %v1563_v0 = vsel %vm633_vm1, %v3379_v1, %v1182_v56 }
 0x1eb   : > { %1455 = vrot.lane.b32.xlu1 %v1082_v62, %s2996_s22  ;;  %1221 = vrot.lane.b32.xlu0 %v987_v53, %s2993_s18  ;;  %v882_v53 = vld [vmem:[#allocation2 + $0x180] sm:$0xff] }
 0x1ec   : > { %v899_v1 = vpack.c.bf16 %v883_v29, %v882_v53  ;;  %v979_v29 = vld [vmem:[#allocation2 + $0x18a] sm:$0xff] }
 0x1ed   : > { %v1400_v37 = vpop.permute.xlu1 %1399  ;;  %v3603_v39 = vpop.permute.xlu0 %1465 }
 0x1ee   : > { %v1708_v56 = vsel %vm1704_vm6, %v1675_v58, %v1400_v37 }
 0x1ef   : > { %1171 = vrot.lane.b32.xlu1 %v1082_v62, %s2992_s13  ;;  %1503 = vrot.lane.b32.xlu0 %v1130_v43, %s2998_s8 }
 0x1f1   : > { %v1448_v61 = vpop.permute.xlu1 %1447  ;;  %v3611_v41 = vpop.permute.xlu0 %1513 }
 0x1f2   : > { %v1741_v33 = vsel %vm1737_vm8, %v1708_v56, %v1448_v61 }
 0x1f3   : > { %1219 = vrot.lane.b32.xlu1 %v1130_v43, %s2993_s18  ;;  %1265 = vrot.lane.b32.xlu0 %v3588_v10, %s4118_s21 }
 0x1f5   : > { %v1164_v3 = vpop.permute.xlu1 %1163  ;;  %v1230_v51 = vpop.permute.xlu0 %1229 }
 0x1f6   : > { %v3624_v16 = vsel %vm1573_vm4, %v1563_v0, %v1230_v51  ;;  %v1536_v40 = vsel %vm633_vm1, %v3413_v27, %v1164_v3  ;;  %v1028_v0 = vld [vmem:[#allocation2 + $0x1a0] sm:$0xff] }
 0x1f7   : > { %1185 = vrot.lane.b32.xlu1 %v3479_v13, %s2992_s13  ;;  %1313 = vrot.lane.b32.xlu0 %v1082_v62, %s2997_s30  ;;  %v930_v13 = vld [vmem:[#allocation2 + $0x181] sm:$0xff] }
 0x1f8   : > { %v947_v30 = vpack.c.bf16 %v931_v46, %v930_v13 }
 0x1f9   : > { %v1212_v55 = vpop.permute.xlu1 %1211  ;;  %v1496_v34 = vpop.permute.xlu0 %1495 }
 0x1fa   : > { %v1581_v63 = vsel %vm1573_vm4, %v1536_v40, %v1212_v55  ;;  %v1774_v47 = vsel %vm1770_vm9, %v1741_v33, %v1496_v34  ;;  %v1023_v55 = vld [vmem:[#allocation2 + $0x168] sm:$0xff]  ;;  %v1024_v34 = vld [vmem:[#allocation2 + $0x170] sm:$0xff] }
 0x1fb   : > { %v1614_v62 = vsel %vm1606_vm5, %v1581_v63, %v3545_v20  ;;  %1283 = vrot.lane.b32.xlu1 %v899_v1, %s4118_s21  ;;  %1361 = vrot.lane.b32.xlu0 %v1130_v43, %s2999_s10  ;;  %v978_v20 = vld [vmem:[#allocation2 + $0x182] sm:$0xff]  ;;  %v1027_v43 = vld [vmem:[#allocation2 + $0x198] sm:$0xff]  ;;  %v3685_v46 = vpack.c.bf16 %v1024_v34, %v1023_v55 }
 0x1fc   : > { %2690 = vmatmul.mubr.msk.bf16.vlgmr.msra.gmra.mrb[16].mxu1 %vm1846_vm10, %v1774_v47  ;;  %v1646_v27 = vsel %vm390_vm0, %v1614_v62, %v3551_v25  ;;  %v1533_v25 = vsel %vm633_vm1, %v3295_v44, %v3464_v5  ;;  %v3663_v52 = vpack.c.bf16 %v979_v29, %v978_v20  ;;  %v1044_v44 = vpack.c.bf16 %v1028_v0, %v1027_v43  ;;  %v1071_v62 = vld [vmem:[#allocation2 + $0x169] sm:$0xff] }
 0x1fd   : > { %v1416_v37 = vpop.permute.xlu1 %1415  ;;  %v1258_v61 = vpop.permute.xlu0 %1257  ;;  %v3652_v53 = vsel %vm1671_vm7, %v1646_v27, %v3560_v31  ;;  %v1579_v58 = vsel %vm1573_vm4, %v1533_v25, %v3462_v4 }
 0x1fe   : > { %v1724_v3 = vsel %vm1704_vm6, %v1691_v12, %v1416_v37  ;;  %v1612_v5 = vsel %vm1606_vm5, %v1579_v58, %v1258_v61  ;;  %v1557_v37 = vsel %vm633_vm1, %v3327_v14, %v3495_v22  ;;  %v1075_v22 = vld [vmem:[#allocation2 + $0x199] sm:$0xff]  ;;  %v1124_v58 = vld [vmem:[#allocation2 + $0x1a2] sm:$0xff] }
 0x1ff   : > { %1331 = vrot.lane.b32.xlu1 %v947_v30, %s2997_s30  ;;  %1517 = vrot.lane.b32.xlu0 %v3488_v19, %s2998_s8 }
 0x201   : > { %v1464_v31 = vpop.permute.xlu1 %1463  ;;  %v1306_v51 = vpop.permute.xlu0 %1305 }
 0x202   : > { %v1757_v54 = vsel %vm1737_vm8, %v1724_v3, %v1464_v31  ;;  %v1644_v18 = vsel %vm390_vm0, %v1612_v5, %v1306_v51 }
 0x203   : > { %1379 = vrot.lane.b32.xlu1 %v3663_v52, %s2999_s10  ;;  %1233 = vrot.lane.b32.xlu0 %v3488_v19, %s2993_s18 }
 0x205   : > { %v1180_v56 = vpop.permute.xlu1 %1179  ;;  %v1354_v33 = vpop.permute.xlu0 %1353 }
 0x206   : > { %v1677_v40 = vsel %vm1671_vm7, %v1644_v18, %v1354_v33  ;;  %v1560_v6 = vsel %vm633_vm1, %v3424_v36, %v1180_v56 }
 0x207   : > { %v1710_v4 = vsel %vm1704_vm6, %v1677_v40, %v3567_v38  ;;  %1427 = vrot.lane.b32.xlu1 %v1044_v44, %s2994_s11  ;;  %1425 = vrot.lane.b32.xlu0 %v899_v1, %s2994_s11  ;;  %v1072_v1 = vld [vmem:[#allocation2 + $0x171] sm:$0xff] }
 0x208   : > { %v1743_v19 = vsel %vm1737_vm8, %v1710_v4, %v3573_v49  ;;  %v1119_v49 = vld [vmem:[#allocation2 + $0x16a] sm:$0xff]  ;;  %v1090_v29 = vpack.c.bf16 %v1072_v1, %v1071_v62 }
 0x209   : > { %v1228_v63 = vpop.permute.xlu1 %1227  ;;  %v1512_v47 = vpop.permute.xlu0 %1511  ;;  %v1776_v13 = vsel %vm1770_vm9, %v1743_v19, %v3580_v59  ;;  %v1138_v25 = vpack.c.bf16 %v1120_v8, %v1119_v49 }
 0x20a   : > { %v1597_v38 = vsel %vm1573_vm4, %v1560_v6, %v1228_v63  ;;  %v3689_v27 = vsel %vm1770_vm9, %v1757_v54, %v1512_v47  ;;  %2693 = vmatprep.mubr.msk.bf16.mxu1 %vm1846_vm10, %v1776_v13  ;;  %v1123_v54 = vld [vmem:[#allocation2 + $0x19a] sm:$0xff] }
 0x20b   : > { %v1630_v36 = vsel %vm1606_vm5, %v1597_v38, %v3571_v48  ;;  %1423 = vrot.lane.b32.xlu1 %v3685_v46, %s2994_s11  ;;  %1473 = vrot.lane.b32.xlu0 %v947_v30, %s2996_s22  ;;  %v1595_v48 = vsel %vm1573_vm4, %v1557_v37, %v3493_v57 }
 0x20c   : > { %v1662_v59 = vsel %vm390_vm0, %v1630_v36, %v3578_v45 }
 0x20d   : > { %v1264_v61 = vpop.permute.xlu1 %1263  ;;  %v1274_v20 = vpop.permute.xlu0 %1273  ;;  %v1695_v12 = vsel %vm1671_vm7, %v1662_v59, %v3586_v2  ;;  %v1076_v2 = vld [vmem:[#allocation2 + $0x1a1] sm:$0xff] }
 0x20e   : > { %v1628_v45 = vsel %vm1606_vm5, %v1595_v48, %v1274_v20  ;;  %v1092_v51 = vpack.c.bf16 %v1076_v2, %v1075_v22 }
 0x20f   : > { %1471 = vrot.lane.b32.xlu1 %v1090_v29, %s2996_s22  ;;  %1519 = vrot.lane.b32.xlu0 %v1138_v25, %s2998_s8 }
 0x211   : > { %v1312_v30 = vpop.permute.xlu1 %1311  ;;  %v1322_v43 = vpop.permute.xlu0 %1321 }
 0x212   : > { %v1660_v14 = vsel %vm390_vm0, %v1628_v45, %v1322_v43 }
 0x213   : > { %1187 = vrot.lane.b32.xlu1 %v1090_v29, %s2992_s13  ;;  %1281 = vrot.lane.b32.xlu0 %v3685_v46, %s4118_s21 }
 0x215   : > { %v1360_v0 = vpop.permute.xlu1 %1359  ;;  %v1370_v3 = vpop.permute.xlu0 %1369 }
 0x216   : > { %v1693_v31 = vsel %vm1671_vm7, %v1660_v14, %v1370_v3 }
 0x217   : > { %v1726_v57 = vsel %vm1704_vm6, %v1693_v31, %v3596_v24  ;;  %1235 = vrot.lane.b32.xlu1 %v1138_v25, %s2993_s18  ;;  %1329 = vrot.lane.b32.xlu0 %v1090_v29, %s2997_s30  ;;  %v1140_v24 = vpack.c.bf16 %v1124_v58, %v1123_v54 }
 0x218   : > { %v1759_v44 = vsel %vm1737_vm8, %v1726_v57, %v3603_v39 }
 0x219   : > { %v1170_v5 = vpop.permute.xlu1 %1169  ;;  %v1406_v18 = vpop.permute.xlu0 %1405  ;;  %v3722_v56 = vsel %vm1770_vm9, %v1759_v44, %v3611_v41 }
 0x21a   : > { %v1545_v34 = vsel %vm633_vm1, %v3440_v50, %v1170_v5 }
 0x21b   : > { %1475 = vrot.lane.b32.xlu1 %v1092_v51, %s2996_s22  ;;  %1377 = vrot.lane.b32.xlu0 %v1138_v25, %s2999_s10  ;;  %s4119_s10 = sshll.u32 %s3154_s20, 8  ;;  %s3000_s22 = smov [#allocation6]  }
 0x21c   : > { %s3921_s19 = scalar_lea.vmem [#allocation6], %s4119_s10  ;;  %s2908_s30 = sshll.u32 %s3000_s22, 4  ;;  %s2909_s30 = int_to_ptr.vmem [resolvable:$false] %s2908_s30 }
 0x21d   : > { %v1280_v33 = vpop.permute.xlu1 %1279  ;;  %v1454_v40 = vpop.permute.xlu0 %1453  ;;  %s2425_s21 = sshll.u32 %s3921_s19, 4  ;;  %s4046_s21 = int_to_ptr.vmem [resolvable:$true] %s2425_s21 }
 0x21e   : > { %p2911_p6 = scmp.lt.s32.totalorder %s4046_s21, %s2909_s30 }
 0x21f   : > { %1523 = vrot.lane.b32.xlu1 %v1140_v24, %s2998_s8  ;;  %1521 = vrot.lane.b32.xlu0 %v3663_v52, %s2998_s8  ;;  %s2910_s8 = scalar_lea.vmem %s2909_s30, 8192 }
 0x221   : > { %v1328_v55 = vpop.permute.xlu1 %1327  ;;  %v1502_v39 = vpop.permute.xlu0 %1501 }
 0x225   : > { %v1376_v4 = vpop.permute.xlu1 %1375  ;;  %v1218_v41 = vpop.permute.xlu0 %1217 }
 0x226   : > { %v3732_v19 = vsel %vm1573_vm4, %v1545_v34, %v1218_v41 }
 0x229   : > { %v1404_v6 = vpop.permute.xlu1 %1403  ;;  %v1422_v63 = vpop.permute.xlu0 %1421 }
 0x22a   : > { %v1712_v62 = vsel %vm1704_vm6, %v3652_v53, %v1404_v6 }
 0x22d   : > { %v1452_v47 = vpop.permute.xlu1 %1451  ;;  %v1470_v13 = vpop.permute.xlu0 %1469 }
 0x22e   : > { %v1745_v38 = vsel %vm1737_vm8, %v1712_v62, %v1452_v47 }
 0x231   : > { %v1168_v52 = vpop.permute.xlu1 %1167  ;;  %v1500_v1 = vpop.permute.xlu0 %1499 }
 0x232   : > { %v1778_v49 = vsel %vm1770_vm9, %v1745_v38, %v1500_v1  ;;  %v1542_v50 = vsel %vm633_vm1, %v3497_v23, %v1168_v52 }
 0x233   : > { %2694 = vmatmul.mubr.msk.bf16.gmra.mrb[20].mxu1 %vm1846_vm10, %v1778_v49 }
 0x235   : > { %v1216_v8 = vpop.permute.xlu1 %1215  ;;  %v1262_v36 = vpop.permute.xlu0 %1261 }
 0x236   : > { %v1585_v59 = vsel %vm1573_vm4, %v1542_v50, %v1216_v8  ;;  %v1616_v45 = vsel %vm1606_vm5, %v3591_v15, %v1262_v36 }
 0x237   : > { %v1618_v37 = vsel %vm1606_vm5, %v1585_v59, %v1264_v61 }
 0x238   : > { %v1650_v20 = vsel %vm390_vm0, %v1618_v37, %v1312_v30 }
 0x239   : > { %v1420_v53 = vpop.permute.xlu1 %1419  ;;  %v1310_v29 = vpop.permute.xlu0 %1309  ;;  %v1683_v25 = vsel %vm1671_vm7, %v1650_v20, %v1360_v0 }
 0x23a   : > { %v1728_v48 = vsel %vm1704_vm6, %v1695_v12, %v1420_v53  ;;  %v1648_v43 = vsel %vm390_vm0, %v1616_v45, %v1310_v29 }
 0x23d   : > { %v1468_v23 = vpop.permute.xlu1 %1467  ;;  %v1358_v14 = vpop.permute.xlu0 %1357 }
 0x23e   : > { %v1761_v22 = vsel %vm1737_vm8, %v1728_v48, %v1468_v23  ;;  %v1681_v2 = vsel %vm1671_vm7, %v1648_v43, %v1358_v14 }
 0x23f   : > { %v1714_v61 = vsel %vm1704_vm6, %v1681_v2, %v1406_v18 }
 0x240   : > { %v1747_v30 = vsel %vm1737_vm8, %v1714_v61, %v1454_v40 }
 0x241   : > { %v1184_v3 = vpop.permute.xlu1 %1183  ;;  %v1516_v31 = vpop.permute.xlu0 %1515  ;;  %v1780_v0 = vsel %vm1770_vm9, %v1747_v30, %v1502_v39 }
 0x242   : > { %v3755_v12 = vsel %vm1770_vm9, %v1761_v22, %v1516_v31  ;;  %2697 = vmatprep.mubr.msk.bf16.mxu1 %vm1846_vm10, %v1780_v0  ;;  %v1566_v15 = vsel %vm633_vm1, %v3526_v60, %v1184_v3 }
 0x245   : > { %v1232_v57 = vpop.permute.xlu1 %1231  ;;  %v1278_v51 = vpop.permute.xlu0 %1277 }
 0x246   : > { %v1601_v54 = vsel %vm1573_vm4, %v1566_v15, %v1232_v57  ;;  %v1632_v40 = vsel %vm1606_vm5, %v3624_v16, %v1278_v51 }
 0x247   : > { %v1634_v58 = vsel %vm1606_vm5, %v1601_v54, %v1280_v33 }
 0x248   : > { %v1666_v44 = vsel %vm390_vm0, %v1634_v58, %v1328_v55 }
 0x249   : > { %v1268_v5 = vpop.permute.xlu1 %1267  ;;  %v1326_v18 = vpop.permute.xlu0 %1325  ;;  %v3764_v24 = vsel %vm1671_vm7, %v1666_v44, %v1376_v4  ;;  %v2092_v4 = vld [vmem:[%s4103_s3] sm:$0xf] }
 0x24a   : > { %v1664_v39 = vsel %vm390_vm0, %v1632_v40, %v1326_v18  ;;  %2760 = vmatprep.subr.msk.bf16.mxu0 %vm1879_vm3, %v2092_v4  ;;  %v2149_v16 = vsel %vm1879_vm3, %v2092_v4, 0 }
 0x24b   : > { %2722 = vmatpush3.bf16.msra.mxu0 %v2149_v16 }
 0x24d   : > { %v1316_v34 = vpop.permute.xlu1 %1315  ;;  %v1374_v60 = vpop.permute.xlu0 %1373 }
 0x24e   : > { %v1697_v41 = vsel %vm1671_vm7, %v1664_v39, %v1374_v60  ;;  %v737_v60 = vld [vmem:[#allocation2 + $0x158] sm:$0xff] }
 0x24f   : > { %v1730_v6 = vsel %vm1704_vm6, %v1697_v41, %v1422_v63 }
 0x250   : > { %v3772_v33 = vsel %vm1737_vm8, %v1730_v6, %v1470_v13 }
 0x251   : > { %v1364_v55 = vpop.permute.xlu1 %1363  ;;  %v1410_v47 = vpop.permute.xlu0 %1409 }
 0x255   : > { %v1174_v62 = vpop.permute.xlu1 %1173  ;;  %v1458_v38 = vpop.permute.xlu0 %1457 }
 0x256   : > { %v1551_v13 = vsel %vm633_vm1, %v3558_v28, %v1174_v62 }
 0x259   : > { %v1408_v52 = vpop.permute.xlu1 %1407  ;;  %v1506_v1 = vpop.permute.xlu0 %1505 }
 0x25a   : > { %v1716_v50 = vsel %vm1704_vm6, %v1683_v25, %v1408_v52 }
 0x25d   : > { %v1456_v49 = vpop.permute.xlu1 %1455  ;;  %v1222_v63 = vpop.permute.xlu0 %1221 }
 0x25e   : > { %v1749_v8 = vsel %vm1737_vm8, %v1716_v50, %v1456_v49  ;;  %v1591_v36 = vsel %vm1573_vm4, %v1551_v13, %v1222_v63 }
 0x25f   : > { %v1624_v53 = vsel %vm1606_vm5, %v1591_v36, %v3547_v21 }
 0x260   : > { %v1656_v45 = vsel %vm390_vm0, %v1624_v53, %v3553_v26 }
 0x261   : > { %v1172_v59 = vpop.permute.xlu1 %1171  ;;  %v1504_v37 = vpop.permute.xlu0 %1503  ;;  %v1689_v21 = vsel %vm1671_vm7, %v1656_v45, %v3562_v32 }
 0x262   : > { %v1782_v20 = vsel %vm1770_vm9, %v1749_v8, %v1504_v37  ;;  %v1548_v29 = vsel %vm633_vm1, %v3588_v10, %v1172_v59  ;;  %v1722_v31 = vsel %vm1704_vm6, %v1689_v21, %v3469_v7 }
 0x263   : > { %2698 = vmatmul.mubr.msk.bf16.gmra.mrb[24].mxu1 %vm1846_vm10, %v1782_v20 }
 0x265   : > { %v1220_v48 = vpop.permute.xlu1 %1219  ;;  %v1266_v28 = vpop.permute.xlu0 %1265 }
 0x266   : > { %v1589_v25 = vsel %vm1573_vm4, %v1548_v29, %v1220_v48  ;;  %v1620_v10 = vsel %vm1606_vm5, %v3732_v19, %v1266_v28  ;;  %v1755_v19 = vsel %vm1737_vm8, %v1722_v31, %v3475_v11  ;;  %v3856_v28 = vld [vmem:[%s4105_s5] ss:$0 sm:$0xff] }
 0x267   : > { %v1622_v43 = vsel %vm1606_vm5, %v1589_v25, %v1268_v5  ;;  %v1788_v58 = vsel %vm1770_vm9, %v1755_v19, %v3484_v17  ;;  %v736_v17 = vld [vmem:[#allocation2 + $0x150] sm:$0xff] }
 0x268   : > { %v1654_v23 = vsel %vm390_vm0, %v1622_v43, %v1316_v34 }
 0x269   : > { %v1687_v14 = vsel %vm1671_vm7, %v1654_v23, %v1364_v55  ;;  %v1186_v22 = vpop.permute.xlu1 %1185  ;;  %v1314_v2 = vpop.permute.xlu0 %1313  ;;  %v754_v55 = vpack.c.bf16 %v737_v60, %v736_v17 }
 0x26a   : > { %v1720_v61 = vsel %vm1704_vm6, %v1687_v14, %v3509_v35  ;;  %v1652_v30 = vsel %vm390_vm0, %v1620_v10, %v1314_v2 }
 0x26b   : > { %v1753_v32 = vsel %vm1737_vm8, %v1720_v61, %v3515_v42 }
 0x26c   : > { %v1786_v7 = vsel %vm1770_vm9, %v1753_v32, %v3538_v9 }
 0x26d   : > { %v1284_v26 = vpop.permute.xlu1 %1283  ;;  %v1362_v3 = vpop.permute.xlu0 %1361 }
 0x26e   : > { %v1685_v0 = vsel %vm1671_vm7, %v1652_v30, %v1362_v3 }
 0x26f   : > { %v1718_v15 = vsel %vm1704_vm6, %v1685_v0, %v1410_v47 }
 0x270   : > { %v1751_v57 = vsel %vm1737_vm8, %v1718_v15, %v1458_v38  ;;  %v1569_v38 = vsel %vm633_vm1, %v754_v55, %v1186_v22 }
 0x271   : > { %v1332_v35 = vpop.permute.xlu1 %1331  ;;  %v1518_v51 = vpop.permute.xlu0 %1517  ;;  %v1784_v54 = vsel %vm1770_vm9, %v1751_v57, %v1506_v1 }
 0x272   : > { %2701 = vmatprep.mubr.msk.bf16.mxu1 %vm1846_vm10, %v1784_v54  ;;  %v1796_v34 = vsel %vm1770_vm9, %v3772_v33, %v1518_v51 }
 0x273   : > { %2702 = vmatmul.mubr.msk.bf16.gmra.mrb[28].mxu1 %vm1846_vm10, %v1786_v7 }
 0x274   : > { %2705 = vmatprep.mubr.msk.bf16.mxu1 %vm1846_vm10, %v1788_v58 }
 0x275   : > { %v1380_v42 = vpop.permute.xlu1 %1379  ;;  %v1234_v44 = vpop.permute.xlu0 %1233 }
 0x276   : > { %v1603_v16 = vsel %vm1573_vm4, %v1569_v38, %v1234_v44 }
 0x279   : > { %v1428_v5 = vpop.permute.xlu1 %1427  ;;  %v1426_v11 = vpop.permute.xlu0 %1425 }
 0x27b   : > { %2706 = vmatmul.mubr.msk.bf16.gmra.mrb[32].mxu1 %vm1846_vm10, %v3689_v27 }
 0x27c   : > { %2709 = vmatprep.mubr.msk.bf16.mxu1 %vm1846_vm10, %v3722_v56 }
 0x27d   : > { %v1424_v18 = vpop.permute.xlu1 %1423  ;;  %v1474_v40 = vpop.permute.xlu0 %1473 }
 0x27e   : > { %v1732_v27 = vsel %vm1704_vm6, %v3764_v24, %v1424_v18 }
 0x281   : > { %v1472_v9 = vpop.permute.xlu1 %1471  ;;  %v1520_v39 = vpop.permute.xlu0 %1519 }
 0x282   : > { %v1765_v56 = vsel %vm1737_vm8, %v1732_v27, %v1472_v9 }
 0x283   : > { %2710 = vmatmul.mubr.msk.bf16.gmra.mrb[36].mxu1 %vm1846_vm10, %v3755_v12  ;;  %v1798_v12 = vsel %vm1770_vm9, %v1765_v56, %v1520_v39 }
 0x284   : > { %2713 = vmatprep.mubr.msk.bf16.mxu1 %vm1846_vm10, %v1796_v34 }
 0x285   : > { %v1188_v41 = vpop.permute.xlu1 %1187  ;;  %v1282_v6 = vpop.permute.xlu0 %1281 }
 0x286   : > { %v1572_v47 = vsel %vm633_vm1, %v3685_v46, %v1188_v41  ;;  %v1636_v24 = vsel %vm1606_vm5, %v1603_v16, %v1282_v6 }
 0x289   : > { %v1236_v62 = vpop.permute.xlu1 %1235  ;;  %v1330_v33 = vpop.permute.xlu0 %1329 }
 0x28a   : > { %v1605_v4 = vsel %vm1573_vm4, %v1572_v47, %v1236_v62  ;;  %v1668_v46 = vsel %vm390_vm0, %v1636_v24, %v1330_v33 }
 0x28b   : > { %v1638_v52 = vsel %vm1606_vm5, %v1605_v4, %v1284_v26  ;;  %2714 = vmatmul.mubr.msk.bf16.gmra.mrb[40].mxu1 %vm1846_vm10, %v1798_v12 }
 0x28c   : > { %v1670_v1 = vsel %vm390_vm0, %v1638_v52, %v1332_v35 }
 0x28d   : > { %v1703_v49 = vsel %vm1671_vm7, %v1670_v1, %v1380_v42  ;;  %v1476_v63 = vpop.permute.xlu1 %1475  ;;  %v1378_v13 = vpop.permute.xlu0 %1377 }
 0x28e   : > { %v1736_v50 = vsel %vm1704_vm6, %v1703_v49, %v1428_v5  ;;  %v1701_v8 = vsel %vm1671_vm7, %v1668_v46, %v1378_v13 }
 0x28f   : > { %v1734_v36 = vsel %vm1704_vm6, %v1701_v8, %v1426_v11  ;;  %v1769_v37 = vsel %vm1737_vm8, %v1736_v50, %v1476_v63 }
 0x290   : > { %v1767_v59 = vsel %vm1737_vm8, %v1734_v36, %v1474_v40 }
 0x291   : > { %v1524_v20 = vpop.permute.xlu1 %1523  ;;  %v1522_v53 = vpop.permute.xlu0 %1521 }
 0x292   : > { %v1802_v29 = vsel %vm1770_vm9, %v1769_v37, %v1524_v20  ;;  %v1800_v48 = vsel %vm1770_vm9, %v1767_v59, %v1522_v53 }
 0x293   : > { %2717 = vmatprep.mubr.msk.bf16.mxu1 %vm1846_vm10, %v1800_v48 }
 0x294   : > { %2718 = vmatmul.mubr.msk.bf16.gmra.mrb[44].mxu1 %vm1846_vm10, %v1802_v29 }
 0x2cf   : > { %v2691_v25 = vpop.f32.mrb[16].mxu1 }
 0x2d0   : > { %v1926_v45 = vadd.f32 %v2691_v25, %v3856_v28  ;;  %v1917_v43 = vpop.f32.mrb[17].mxu1 }
 0x2d1   : > { %v1918_v23 = vadd.f32 %v3856_v28, %v1917_v43  ;;  %v2692_v14 = vpop.f32.mrb[18].mxu1 }
 0x2d2   : > { %v1929_v22 = vadd.f32 %v2692_v14, %v3856_v28  ;;  %v1920_v2 = vpop.f32.mrb[19].mxu1  ;;  %v2046_v10 = vmax.f32 %v1926_v45, 0.0 }
 0x2d3   : > { %v1921_v21 = vadd.f32 %v3856_v28, %v1920_v2  ;;  %v2044_v30 = vmax.f32 %v1918_v23, 0.0 }
 0x2d4   : > { %v2047_v61 = vmax.f32 %v1929_v22, 0.0 }
 0x2d5   : > { %v2045_v26 = vmax.f32 %v1921_v21, 0.0 }
 0x2d6   : > { %v2077_v3 = vpack.c.bf16 %v2047_v61, %v2046_v10 }
 0x2d7   : > { %v2076_v31 = vpack.c.bf16 %v2045_v26, %v2044_v30 }
 0x2d9   : > { %2723 = vmatprep.mubr.msk.bf16.mxu0 %vm633_vm1, %v2076_v31 }
 0x2da   : > { %2724 = vmatmul.mubr.msk.bf16.vlgmr.msra.gmra.mrb[16].mxu0 %vm633_vm1, %v2077_v3 }
 0x306   : > { %v2695_v0 = vpop.f32.mrb[20].mxu1 }
 0x307   : > { %v1942_v15 = vadd.f32 %v2695_v0, %v3856_v28  ;;  %v1933_v32 = vpop.f32.mrb[21].mxu1 }
 0x308   : > { %v1934_v57 = vadd.f32 %v3856_v28, %v1933_v32  ;;  %v2696_v19 = vpop.f32.mrb[22].mxu1 }
 0x309   : > { %v1945_v35 = vadd.f32 %v2696_v19, %v3856_v28  ;;  %v1936_v51 = vpop.f32.mrb[23].mxu1  ;;  %v2050_v7 = vmax.f32 %v1942_v15, 0.0 }
 0x30a   : > { %v1937_v54 = vadd.f32 %v3856_v28, %v1936_v51  ;;  %v2048_v42 = vmax.f32 %v1934_v57, 0.0 }
 0x30b   : > { %v2051_v58 = vmax.f32 %v1945_v35, 0.0 }
 0x30c   : > { %v2049_v44 = vmax.f32 %v1937_v54, 0.0 }
 0x30d   : > { %v2079_v5 = vpack.c.bf16 %v2051_v58, %v2050_v7 }
 0x30e   : > { %v2078_v11 = vpack.c.bf16 %v2049_v44, %v2048_v42 }
 0x310   : > { %2727 = vmatprep.mubr.msk.bf16.mxu0 %vm633_vm1, %v2078_v11 }
 0x311   : > { %2728 = vmatmul.mubr.msk.bf16.gmra.mrb[20].mxu0 %vm633_vm1, %v2079_v5 }
 0x336   : > { %v2699_v18 = vpop.f32.mrb[24].mxu1 }
 0x337   : > { %v1958_v40 = vadd.f32 %v2699_v18, %v3856_v28  ;;  %v1949_v9 = vpop.f32.mrb[25].mxu1 }
 0x338   : > { %v1950_v39 = vadd.f32 %v3856_v28, %v1949_v9  ;;  %v2700_v34 = vpop.f32.mrb[26].mxu1 }
 0x339   : > { %v1961_v17 = vadd.f32 %v2700_v34, %v3856_v28  ;;  %v1952_v60 = vpop.f32.mrb[27].mxu1  ;;  %v2054_v6 = vmax.f32 %v1958_v40, 0.0 }
 0x33a   : > { %v1953_v41 = vadd.f32 %v3856_v28, %v1952_v60  ;;  %v2052_v56 = vmax.f32 %v1950_v39, 0.0 }
 0x33b   : > { %v2055_v27 = vmax.f32 %v1961_v17, 0.0 }
 0x33c   : > { %v2053_v55 = vmax.f32 %v1953_v41, 0.0 }
 0x33d   : > { %v2081_v47 = vpack.c.bf16 %v2055_v27, %v2054_v6 }
 0x33e   : > { %v2080_v62 = vpack.c.bf16 %v2053_v55, %v2052_v56 }
 0x340   : > { %2731 = vmatprep.mubr.msk.bf16.mxu0 %vm633_vm1, %v2080_v62 }
 0x341   : > { %2732 = vmatmul.mubr.msk.bf16.gmra.mrb[24].mxu0 %vm633_vm1, %v2081_v47 }
 0x346   : > { %v2703_v33 = vpop.f32.mrb[28].mxu1 }
 0x347   : > { %v1974_v38 = vadd.f32 %v2703_v33, %v3856_v28  ;;  %v1965_v12 = vpop.f32.mrb[29].mxu1 }
 0x348   : > { %v1966_v4 = vadd.f32 %v3856_v28, %v1965_v12  ;;  %v2704_v16 = vpop.f32.mrb[30].mxu1 }
 0x349   : > { %v1977_v52 = vadd.f32 %v2704_v16, %v3856_v28  ;;  %v1968_v24 = vpop.f32.mrb[31].mxu1  ;;  %v2058_v46 = vmax.f32 %v1974_v38, 0.0 }
 0x34a   : > { %v1969_v1 = vadd.f32 %v3856_v28, %v1968_v24  ;;  %v2056_v63 = vmax.f32 %v1966_v4, 0.0 }
 0x34b   : > { %v2059_v49 = vmax.f32 %v1977_v52, 0.0 }
 0x34c   : > { %v2057_v13 = vmax.f32 %v1969_v1, 0.0  ;;  %v3909_v1 = vld [vmem:[%s4106_s6] ss:$0 sm:$0xff] }
 0x34d   : > { %v2083_v50 = vpack.c.bf16 %v2059_v49, %v2058_v46 }
 0x34e   : > { %v2082_v8 = vpack.c.bf16 %v2057_v13, %v2056_v63  ;;  %v2707_v36 = vpop.f32.mrb[32].mxu1 }
 0x34f   : > { %v1990_v59 = vadd.f32 %v2707_v36, %v3856_v28  ;;  %v1981_v37 = vpop.f32.mrb[33].mxu1 }
 0x350   : > { %v1982_v20 = vadd.f32 %v3856_v28, %v1981_v37  ;;  %v2708_v53 = vpop.f32.mrb[34].mxu1  ;;  %2735 = vmatprep.mubr.msk.bf16.mxu0 %vm633_vm1, %v2082_v8  ;;  %v2843_v37 = vld [vmem:[%s3160_s23] sm:$0xff] }
 0x351   : > { %v1993_v29 = vadd.f32 %v2708_v53, %v3856_v28  ;;  %v1984_v48 = vpop.f32.mrb[35].mxu1  ;;  %2736 = vmatmul.mubr.msk.bf16.gmra.mrb[28].mxu0 %vm633_vm1, %v2083_v50  ;;  %v2062_v45 = vmax.f32 %v1990_v59, 0.0  ;;  %v2842_v50 = vld [vmem:[%s3160_s23 + $0x10] sm:$0xff] }
 0x352   : > { %v1985_v25 = vadd.f32 %v3856_v28, %v1984_v48  ;;  %v2060_v23 = vmax.f32 %v1982_v20, 0.0  ;;  %v2844_v48 = vld [vmem:[%s3160_s23 + $0x18] sm:$0xff] }
 0x353   : > { %v2063_v43 = vmax.f32 %v1993_v29, 0.0 }
 0x354   : > { %v2061_v14 = vmax.f32 %v1985_v25, 0.0 }
 0x355   : > { %v2085_v22 = vpack.c.bf16 %v2063_v43, %v2062_v45  ;;  %v2845_v43 = vld [vmem:[%s3160_s23 + $0x8] sm:$0xff] }
 0x356   : > { %v2084_v2 = vpack.c.bf16 %v2061_v14, %v2060_v23  ;;  %v2711_v21 = vpop.f32.mrb[36].mxu1 }
 0x357   : > { %v2006_v10 = vadd.f32 %v2711_v21, %v3856_v28  ;;  %v1997_v61 = vpop.f32.mrb[37].mxu1 }
 0x358   : > { %v1998_v30 = vadd.f32 %v3856_v28, %v1997_v61  ;;  %v2712_v26 = vpop.f32.mrb[38].mxu1  ;;  %2739 = vmatprep.mubr.msk.bf16.mxu0 %vm633_vm1, %v2084_v2 }
 0x359   : > { %v2009_v3 = vadd.f32 %v2712_v26, %v3856_v28  ;;  %v2000_v31 = vpop.f32.mrb[39].mxu1  ;;  %2740 = vmatmul.mubr.msk.bf16.gmra.mrb[32].mxu0 %vm633_vm1, %v2085_v22  ;;  %v2066_v15 = vmax.f32 %v2006_v10, 0.0  ;;  %v2846_v26 = vld [vmem:[%s3160_s23 + $0x30] sm:$0xff] }
 0x35a   : > { %v2001_v0 = vadd.f32 %v3856_v28, %v2000_v31  ;;  %v2064_v57 = vmax.f32 %v1998_v30, 0.0 }
 0x35b   : > { %v2067_v32 = vmax.f32 %v2009_v3, 0.0 }
 0x35c   : > { %v2065_v19 = vmax.f32 %v2001_v0, 0.0 }
 0x35d   : > { %v2087_v35 = vpack.c.bf16 %v2067_v32, %v2066_v15  ;;  %v2847_v15 = vld [vmem:[%s3160_s23 + $0x20] sm:$0xff] }
 0x35e   : > { %v2086_v51 = vpack.c.bf16 %v2065_v19, %v2064_v57  ;;  %v2715_v54 = vpop.f32.mrb[40].mxu1 }
 0x35f   : > { %v2022_v7 = vadd.f32 %v2715_v54, %v3856_v28  ;;  %v2013_v58 = vpop.f32.mrb[41].mxu1 }
 0x360   : > { %v2014_v42 = vadd.f32 %v3856_v28, %v2013_v58  ;;  %v2716_v44 = vpop.f32.mrb[42].mxu1  ;;  %2743 = vmatprep.mubr.msk.bf16.mxu0 %vm633_vm1, %v2086_v51 }
 0x361   : > { %v2025_v5 = vadd.f32 %v2716_v44, %v3856_v28  ;;  %v2016_v11 = vpop.f32.mrb[43].mxu1  ;;  %2744 = vmatmul.mubr.msk.bf16.gmra.mrb[36].mxu0 %vm633_vm1, %v2087_v35  ;;  %v2070_v40 = vmax.f32 %v2022_v7, 0.0  ;;  %v2848_v35 = vld [vmem:[%s3160_s23 + $0x38] sm:$0xff]  ;;  %v2849_v7 = vld [vmem:[%s3160_s23 + $0x28] sm:$0xff] }
 0x362   : > { %v2017_v18 = vadd.f32 %v3856_v28, %v2016_v11  ;;  %v2068_v39 = vmax.f32 %v2014_v42, 0.0 }
 0x363   : > { %v2071_v9 = vmax.f32 %v2025_v5, 0.0 }
 0x364   : > { %v2069_v34 = vmax.f32 %v2017_v18, 0.0 }
 0x365   : > { %v2089_v17 = vpack.c.bf16 %v2071_v9, %v2070_v40 }
 0x366   : > { %v2088_v60 = vpack.c.bf16 %v2069_v34, %v2068_v39  ;;  %v2850_v39 = vld [vmem:[%s3160_s23 + $0x50] sm:$0xff] }
 0x367   : > { %v2719_v41 = vpop.f32.mrb[44].mxu1 }
 0x368   : > { %v2038_v6 = vadd.f32 %v2719_v41, %v3856_v28  ;;  %v2029_v27 = vpop.f32.mrb[45].mxu1  ;;  %2747 = vmatprep.mubr.msk.bf16.mxu0 %vm633_vm1, %v2088_v60  ;;  %v2851_v41 = vld [vmem:[%s3160_s23 + $0x40] sm:$0xff] }
 0x369   : > { %v2030_v56 = vadd.f32 %v3856_v28, %v2029_v27  ;;  %v2720_v55 = vpop.f32.mrb[46].mxu1  ;;  %2748 = vmatmul.mubr.msk.bf16.gmra.mrb[40].mxu0 %vm633_vm1, %v2089_v17 }
 0x36a   : > { %v2041_v47 = vadd.f32 %v2720_v55, %v3856_v28  ;;  %v2032_v62 = vpop.f32.mrb[47].mxu1  ;;  %v2074_v38 = vmax.f32 %v2038_v6, 0.0  ;;  %v2852_v55 = vld [vmem:[%s3160_s23 + $0x58] sm:$0xff] }
 0x36b   : > { %v2033_v33 = vadd.f32 %v3856_v28, %v2032_v62  ;;  %v2072_v4 = vmax.f32 %v2030_v56, 0.0 }
 0x36c   : > { %v2075_v12 = vmax.f32 %v2041_v47, 0.0 }
 0x36d   : > { %v2073_v16 = vmax.f32 %v2033_v33, 0.0  ;;  %v2853_v33 = vld [vmem:[%s3160_s23 + $0x48] sm:$0xff] }
 0x36e   : > { %v2091_v52 = vpack.c.bf16 %v2075_v12, %v2074_v38 }
 0x36f   : > { %v2090_v24 = vpack.c.bf16 %v2073_v16, %v2072_v4 }
 0x371   : > { %2751 = vmatprep.mubr.msk.bf16.mxu0 %vm633_vm1, %v2090_v24 }
 0x372   : > { %2752 = vmatmul.mubr.msk.bf16.gmra.mrb[44].mxu0 %vm633_vm1, %v2091_v52 }
 0x3ad   : > { %v2725_v46 = vpop.f32.mrb[16].mxu0 }
 0x3ae   : > { %v2194_v28 = vadd.f32 %v2725_v46, %v3909_v1  ;;  %v2185_v49 = vpop.f32.mrb[17].mxu0 }
 0x3af   : > { %v2186_v63 = vadd.f32 %v3909_v1, %v2185_v49  ;;  %v2726_v13 = vpop.f32.mrb[18].mxu0  ;;  %v2854_v49 = vld [vmem:[%s3160_s23 + $0x70] sm:$0xff] }
 0x3b0   : > { %v2314_v8 = vadd.f32 %v2842_v50, %v2194_v28  ;;  %v2197_v36 = vadd.f32 %v2726_v13, %v3909_v1  ;;  %v2188_v59 = vpop.f32.mrb[19].mxu0 }
 0x3b1   : > { %v2312_v20 = vadd.f32 %v2843_v37, %v2186_v63  ;;  %v2189_v53 = vadd.f32 %v3909_v1, %v2188_v59 }
 0x3b2   : > { %v2346_v29 = vmax.f32 %v2314_v8, 0.0  ;;  %v2315_v25 = vadd.f32 %v2844_v48, %v2197_v36  ;;  %v2855_v8 = vld [vmem:[%s3160_s23 + $0x60] sm:$0xff]  ;;  %v2857_v48 = vld [vmem:[%s3160_s23 + $0x68] sm:$0xff] }
 0x3b3   : > { %v2344_v45 = vmax.f32 %v2312_v20, 0.0  ;;  %v2313_v23 = vadd.f32 %v2845_v43, %v2189_v53  ;;  %v2856_v20 = vld [vmem:[%s3160_s23 + $0x78] sm:$0xff] }
 0x3b4   : > { %2378 = vst.msk [vmem:[%s3921_s19 + $0x10] sm:$0xff] %vm390_vm0, %v2346_v29  ;;  %v2347_v14 = vmax.f32 %v2315_v25, 0.0 }
 0x3b5   : > { %2376 = vst.msk [vmem:[%s3921_s19] sm:$0xff] %vm390_vm0, %v2344_v45  ;;  %v2345_v22 = vmax.f32 %v2313_v23, 0.0 }
 0x3b6   : > { %2379 = vst.msk [vmem:[%s3921_s19 + $0x18] sm:$0xff] %vm390_vm0, %v2347_v14 }
 0x3b7   : > { %2377 = vst.msk [vmem:[%s3921_s19 + $0x8] sm:$0xff] %vm390_vm0, %v2345_v22 }
 0x3e4   : > { %v2729_v2 = vpop.f32.mrb[20].mxu0 }
 0x3e5   : > { %v2210_v21 = vadd.f32 %v2729_v2, %v3909_v1  ;;  %v2201_v10 = vpop.f32.mrb[21].mxu0 }
 0x3e6   : > { %v2202_v61 = vadd.f32 %v3909_v1, %v2201_v10  ;;  %v2730_v30 = vpop.f32.mrb[22].mxu0  ;;  %v2858_v10 = vld [vmem:[%s3160_s23 + $0x90] sm:$0xff] }
 0x3e7   : > { %v2318_v3 = vadd.f32 %v2846_v26, %v2210_v21  ;;  %v2213_v31 = vadd.f32 %v2730_v30, %v3909_v1  ;;  %v2204_v0 = vpop.f32.mrb[23].mxu0 }
 0x3e8   : > { %v2316_v32 = vadd.f32 %v2847_v15, %v2202_v61  ;;  %v2205_v57 = vadd.f32 %v3909_v1, %v2204_v0 }
 0x3e9   : > { %v2350_v19 = vmax.f32 %v2318_v3, 0.0  ;;  %v2319_v51 = vadd.f32 %v2848_v35, %v2213_v31  ;;  %v2859_v3 = vld [vmem:[%s3160_s23 + $0x80] sm:$0xff]  ;;  %v2861_v35 = vld [vmem:[%s3160_s23 + $0x88] sm:$0xff] }
 0x3ea   : > { %v2348_v54 = vmax.f32 %v2316_v32, 0.0  ;;  %v2317_v58 = vadd.f32 %v2849_v7, %v2205_v57  ;;  %v2860_v32 = vld [vmem:[%s3160_s23 + $0x98] sm:$0xff] }
 0x3eb   : > { %2382 = vst.msk [vmem:[%s3921_s19 + $0x30] sm:$0xff] %vm390_vm0, %v2350_v19  ;;  %v2351_v42 = vmax.f32 %v2319_v51, 0.0 }
 0x3ec   : > { %2380 = vst.msk [vmem:[%s3921_s19 + $0x20] sm:$0xff] %vm390_vm0, %v2348_v54  ;;  %v2349_v44 = vmax.f32 %v2317_v58, 0.0 }
 0x3ed   : > { %2383 = vst.msk [vmem:[%s3921_s19 + $0x38] sm:$0xff] %vm390_vm0, %v2351_v42 }
 0x3ee   : > { %2381 = vst.msk [vmem:[%s3921_s19 + $0x28] sm:$0xff] %vm390_vm0, %v2349_v44 }
 0x414   : > { %v2733_v5 = vpop.f32.mrb[24].mxu0 }
 0x415   : > { %v2226_v11 = vadd.f32 %v2733_v5, %v3909_v1  ;;  %v2217_v18 = vpop.f32.mrb[25].mxu0 }
 0x416   : > { %v2218_v40 = vadd.f32 %v3909_v1, %v2217_v18  ;;  %v2734_v9 = vpop.f32.mrb[26].mxu0  ;;  %v2862_v18 = vld [vmem:[%s3160_s23 + $0xb0] sm:$0xff] }
 0x417   : > { %v2322_v34 = vadd.f32 %v2850_v39, %v2226_v11  ;;  %v2229_v17 = vadd.f32 %v2734_v9, %v3909_v1  ;;  %v2220_v60 = vpop.f32.mrb[27].mxu0 }
 0x418   : > { %v2320_v6 = vadd.f32 %v2851_v41, %v2218_v40  ;;  %v2221_v27 = vadd.f32 %v3909_v1, %v2220_v60 }
 0x419   : > { %v2354_v56 = vmax.f32 %v2322_v34, 0.0  ;;  %v2323_v47 = vadd.f32 %v2852_v55, %v2229_v17  ;;  %v2863_v34 = vld [vmem:[%s3160_s23 + $0xa0] sm:$0xff]  ;;  %v2865_v55 = vld [vmem:[%s3160_s23 + $0xa8] sm:$0xff] }
 0x41a   : > { %v2352_v62 = vmax.f32 %v2320_v6, 0.0  ;;  %v2321_v38 = vadd.f32 %v2853_v33, %v2221_v27  ;;  %v2864_v6 = vld [vmem:[%s3160_s23 + $0xb8] sm:$0xff] }
 0x41b   : > { %2386 = vst.msk [vmem:[%s3921_s19 + $0x50] sm:$0xff] %vm390_vm0, %v2354_v56  ;;  %v2355_v12 = vmax.f32 %v2323_v47, 0.0 }
 0x41c   : > { %2384 = vst.msk [vmem:[%s3921_s19 + $0x40] sm:$0xff] %vm390_vm0, %v2352_v62  ;;  %v2353_v4 = vmax.f32 %v2321_v38, 0.0 }
 0x41d   : > { %2387 = vst.msk [vmem:[%s3921_s19 + $0x58] sm:$0xff] %vm390_vm0, %v2355_v12 }
 0x41e   : > { %2385 = vst.msk [vmem:[%s3921_s19 + $0x48] sm:$0xff] %vm390_vm0, %v2353_v4 }
 0x424   : > { %v2737_v16 = vpop.f32.mrb[28].mxu0 }
 0x425   : > { %v2242_v52 = vadd.f32 %v2737_v16, %v3909_v1  ;;  %v2233_v24 = vpop.f32.mrb[29].mxu0 }
 0x426   : > { %v2234_v46 = vadd.f32 %v3909_v1, %v2233_v24  ;;  %v2738_v28 = vpop.f32.mrb[30].mxu0  ;;  %v2866_v24 = vld [vmem:[%s3160_s23 + $0xd0] sm:$0xff] }
 0x427   : > { %v2326_v63 = vadd.f32 %v2854_v49, %v2242_v52  ;;  %v2245_v13 = vadd.f32 %v2738_v28, %v3909_v1  ;;  %v2236_v50 = vpop.f32.mrb[31].mxu0 }
 0x428   : > { %v2324_v36 = vadd.f32 %v2855_v8, %v2234_v46  ;;  %v2237_v59 = vadd.f32 %v3909_v1, %v2236_v50 }
 0x429   : > { %v2358_v37 = vmax.f32 %v2326_v63, 0.0  ;;  %v2327_v53 = vadd.f32 %v2856_v20, %v2245_v13  ;;  %v2867_v63 = vld [vmem:[%s3160_s23 + $0xc0] sm:$0xff]  ;;  %v2869_v20 = vld [vmem:[%s3160_s23 + $0xc8] sm:$0xff] }
 0x42a   : > { %v2356_v29 = vmax.f32 %v2324_v36, 0.0  ;;  %v2325_v25 = vadd.f32 %v2857_v48, %v2237_v59  ;;  %v2868_v36 = vld [vmem:[%s3160_s23 + $0xd8] sm:$0xff] }
 0x42b   : > { %2390 = vst.msk [vmem:[%s3921_s19 + $0x70] sm:$0xff] %vm390_vm0, %v2358_v37  ;;  %v2359_v45 = vmax.f32 %v2327_v53, 0.0 }
 0x42c   : > { %2388 = vst.msk [vmem:[%s3921_s19 + $0x60] sm:$0xff] %vm390_vm0, %v2356_v29  ;;  %v2357_v43 = vmax.f32 %v2325_v25, 0.0  ;;  %v2741_v23 = vpop.f32.mrb[32].mxu0 }
 0x42d   : > { %2391 = vst.msk [vmem:[%s3921_s19 + $0x78] sm:$0xff] %vm390_vm0, %v2359_v45  ;;  %v2258_v14 = vadd.f32 %v2741_v23, %v3909_v1  ;;  %v2249_v22 = vpop.f32.mrb[33].mxu0 }
 0x42e   : > { %2389 = vst.msk [vmem:[%s3921_s19 + $0x68] sm:$0xff] %vm390_vm0, %v2357_v43  ;;  %v2250_v2 = vadd.f32 %v3909_v1, %v2249_v22  ;;  %v2742_v21 = vpop.f32.mrb[34].mxu0  ;;  %v2870_v22 = vld [vmem:[%s3160_s23 + $0xf0] sm:$0xff] }
 0x42f   : > { %v2330_v61 = vadd.f32 %v2858_v10, %v2258_v14  ;;  %v2261_v30 = vadd.f32 %v2742_v21, %v3909_v1  ;;  %v2252_v26 = vpop.f32.mrb[35].mxu0 }
 0x430   : > { %v2328_v31 = vadd.f32 %v2859_v3, %v2250_v2  ;;  %v2253_v0 = vadd.f32 %v3909_v1, %v2252_v26 }
 0x431   : > { %v2362_v15 = vmax.f32 %v2330_v61, 0.0  ;;  %v2331_v57 = vadd.f32 %v2860_v32, %v2261_v30  ;;  %v2871_v61 = vld [vmem:[%s3160_s23 + $0xe0] sm:$0xff]  ;;  %v2873_v32 = vld [vmem:[%s3160_s23 + $0xe8] sm:$0xff] }
 0x432   : > { %v2360_v19 = vmax.f32 %v2328_v31, 0.0  ;;  %v2329_v51 = vadd.f32 %v2861_v35, %v2253_v0  ;;  %v2872_v31 = vld [vmem:[%s3160_s23 + $0xf8] sm:$0xff]  ;;  %s2904_s23 = scalar_lea.vmem %s4046_s21, 4096 }
 0x433   : > { %2394 = vst.msk [vmem:[%s3921_s19 + $0x90] sm:$0xff] %vm390_vm0, %v2362_v15  ;;  %v2363_v54 = vmax.f32 %v2331_v57, 0.0  ;;  %p2905_p8 = scmp.ne.s32.totalorder %s4046_s21, %s2904_s23  ;;  %p2912_p13 = scmp.lt.s32.totalorder %s2910_s8, %s2904_s23 }
 0x434   : > { %2392 = vst.msk [vmem:[%s3921_s19 + $0x80] sm:$0xff] %vm390_vm0, %v2360_v19  ;;  %v2361_v7 = vmax.f32 %v2329_v51, 0.0  ;;  %v2745_v58 = vpop.f32.mrb[36].mxu0 }
 0x435   : > { %2395 = vst.msk [vmem:[%s3921_s19 + $0x98] sm:$0xff] %vm390_vm0, %v2363_v54  ;;  %v2274_v42 = vadd.f32 %v2745_v58, %v3909_v1  ;;  %v2265_v44 = vpop.f32.mrb[37].mxu0  ;;  %p2906_p11 = pnand %p2905_p8, %p4120_p9  ;;  %p2913_p2 = por %p2912_p13, %p2911_p6 }
 0x436   : > { %2393 = vst.msk [vmem:[%s3921_s19 + $0x88] sm:$0xff] %vm390_vm0, %v2361_v7  ;;  %v2266_v5 = vadd.f32 %v3909_v1, %v2265_v44  ;;  %v2746_v11 = vpop.f32.mrb[38].mxu0 }
 0x437   : > { %v2334_v40 = vadd.f32 %v2862_v18, %v2274_v42  ;;  %v2277_v9 = vadd.f32 %v2746_v11, %v3909_v1  ;;  %v2268_v39 = vpop.f32.mrb[39].mxu0  ;;  %p2907_p0 = pneg %p2906_p11 }
 0x438   : > { %v2332_v17 = vadd.f32 %v2863_v34, %v2266_v5  ;;  %v2269_v60 = vadd.f32 %v3909_v1, %v2268_v39 }
 0x439   : > { %v2366_v41 = vmax.f32 %v2334_v40, 0.0  ;;  %v2335_v27 = vadd.f32 %v2864_v6, %v2277_v9  ;;  %p2914_p5 = pnand %p2913_p2, %p2907_p0 }
 0x43a   : > { %v2364_v56 = vmax.f32 %v2332_v17, 0.0  ;;  %v2333_v47 = vadd.f32 %v2865_v55, %v2269_v60 }
 0x43b   : > { %2398 = vst.msk [vmem:[%s3921_s19 + $0xb0] sm:$0xff] %vm390_vm0, %v2366_v41  ;;  %v2367_v62 = vmax.f32 %v2335_v27, 0.0 }
 0x43c   : > { %2396 = vst.msk [vmem:[%s3921_s19 + $0xa0] sm:$0xff] %vm390_vm0, %v2364_v56  ;;  %v2365_v33 = vmax.f32 %v2333_v47, 0.0  ;;  %v2749_v38 = vpop.f32.mrb[40].mxu0 }
 0x43d   : > { %2399 = vst.msk [vmem:[%s3921_s19 + $0xb8] sm:$0xff] %vm390_vm0, %v2367_v62  ;;  %v2290_v12 = vadd.f32 %v2749_v38, %v3909_v1  ;;  %v2281_v4 = vpop.f32.mrb[41].mxu0 }
 0x43e   : > { %2397 = vst.msk [vmem:[%s3921_s19 + $0xa8] sm:$0xff] %vm390_vm0, %v2365_v33  ;;  %v2282_v16 = vadd.f32 %v3909_v1, %v2281_v4  ;;  %v2750_v52 = vpop.f32.mrb[42].mxu0 }
 0x43f   : > { %v2338_v46 = vadd.f32 %v2866_v24, %v2290_v12  ;;  %v2293_v28 = vadd.f32 %v2750_v52, %v3909_v1  ;;  %v2284_v49 = vpop.f32.mrb[43].mxu0 }
 0x440   : > { %v2336_v13 = vadd.f32 %v2867_v63, %v2282_v16  ;;  %v2285_v50 = vadd.f32 %v3909_v1, %v2284_v49 }
 0x441   : > { %v2370_v8 = vmax.f32 %v2338_v46, 0.0  ;;  %v2339_v59 = vadd.f32 %v2868_v36, %v2293_v28 }
 0x442   : > { %v2368_v37 = vmax.f32 %v2336_v13, 0.0  ;;  %v2337_v53 = vadd.f32 %v2869_v20, %v2285_v50 }
 0x443   : > { %2402 = vst.msk [vmem:[%s3921_s19 + $0xd0] sm:$0xff] %vm390_vm0, %v2370_v8  ;;  %v2371_v29 = vmax.f32 %v2339_v59, 0.0 }
 0x444   : > { %2400 = vst.msk [vmem:[%s3921_s19 + $0xc0] sm:$0xff] %vm390_vm0, %v2368_v37  ;;  %v2369_v48 = vmax.f32 %v2337_v53, 0.0 }
 0x445   : > { %2403 = vst.msk [vmem:[%s3921_s19 + $0xd8] sm:$0xff] %vm390_vm0, %v2371_v29  ;;  %v2753_v25 = vpop.f32.mrb[44].mxu0 }
 0x446   : > { %2401 = vst.msk [vmem:[%s3921_s19 + $0xc8] sm:$0xff] %vm390_vm0, %v2369_v48  ;;  %v2306_v45 = vadd.f32 %v2753_v25, %v3909_v1  ;;  %v2297_v43 = vpop.f32.mrb[45].mxu0 }
 0x447   : > { %v2298_v23 = vadd.f32 %v3909_v1, %v2297_v43  ;;  %v2754_v14 = vpop.f32.mrb[46].mxu0 }
 0x448   : > { %v2342_v2 = vadd.f32 %v2870_v22, %v2306_v45  ;;  %v2309_v21 = vadd.f32 %v2754_v14, %v3909_v1  ;;  %v2300_v10 = vpop.f32.mrb[47].mxu0 }
 0x449   : > { %v2340_v30 = vadd.f32 %v2871_v61, %v2298_v23  ;;  %v2301_v26 = vadd.f32 %v3909_v1, %v2300_v10 }
 0x44a   : > { %v2374_v3 = vmax.f32 %v2342_v2, 0.0  ;;  %v2343_v0 = vadd.f32 %v2872_v31, %v2309_v21 }
 0x44b   : > { %v2372_v15 = vmax.f32 %v2340_v30, 0.0  ;;  %v2341_v57 = vadd.f32 %v2873_v32, %v2301_v26 }
 0x44c   : > { %2406 = vst.msk [vmem:[%s3921_s19 + $0xf0] sm:$0xff] %vm390_vm0, %v2374_v3  ;;  %v2375_v19 = vmax.f32 %v2343_v0, 0.0 }
 0x44d   : > { %2404 = vst.msk [vmem:[%s3921_s19 + $0xe0] sm:$0xff] %vm390_vm0, %v2372_v15  ;;  %v2373_v1 = vmax.f32 %v2341_v57, 0.0 }
 0x44e   : > { %2407 = vst.msk [vmem:[%s3921_s19 + $0xf8] sm:$0xff] %vm390_vm0, %v2375_v19 }
 0x44f   : > { %2405 = vst.msk [vmem:[%s3921_s19 + $0xe8] sm:$0xff] %vm390_vm0, %v2373_v1 }
 0x450   : > { %2917 = shalt.err (!%p2914_p5)
}
 0x451   : > { %s2918_s10 = scalar_lea.hbm %s4042_s17, 4096  ;;  %s2922_s18 = scalar_lea.hbm %s4107_s7, 8192 }
 0x452   : > { %p2919_p4 = scmp.ne.s32.totalorder %s4042_s17, %s2918_s10  ;;  %p2923_p12 = scmp.lt.u32.totalorder %s4042_s17, %s4107_s7 }
 0x453   : > { %p2924_p1 = scmp.lt.u32.totalorder %s2922_s18, %s2918_s10  ;;  %p2926_p8 = scmp.lt.u32.totalorder %s2918_s10, %s4042_s17 }
 0x454   : > { %p2920_p7 = pnand %p2919_p4, %p4120_p9 }
 0x455   : > { %p2925_p3 = por %p2924_p1, %p2923_p12 }
 0x456   : > { %p2921_p10 = pneg %p2920_p7 }
 0x457   : > { %p2927_p11 = por %p2926_p8, %p2925_p3 }
 0x459   : > { %p2928_p0 = pnand %p2927_p11, %p2921_p10 }
 0x45b   : > { %2931 = shalt.err (!%p2928_p0)
}
 0x45c   : > { %s3001_s23 = smov 128  }
 0x45d   : > { %2763 = dma.vmem_to_hbm [thread:$0]  (%p4120_p9), %s4046_s21, 4096, %s4042_s17, %s2409_s27, %s3001_s23, %s3001_s23, %s2992_s13  }
 0x45e PF: > { %s2440_s30 = sand.u32 1, %s2966_s24   ;;  %p4121_p6 = scmp.ne.s32.totalorder %s4115_s16, 0 }
 0x45f   : > { %p4122_p13 = scmp.ge.s32.totalorder %s2986_s29, 2  ;;  %s2441_s8 = scalar_lea.sflag [#allocation5], %s2440_s30 }
 0x461   : > { %p2770_p2 = pnand %p4122_p13, %p4121_p6 }
 0x463   : > { %2961 = dma.done.wait (!%p2770_p2), %s2441_s8, 4096  }
 0x464   : > { %2963 = vsyncadd (!%p2770_p2), %s2441_s8, 4294963200  ;;  %s23_s29 = sadd.s32 1, %s2986_s29   ;;  %s4123_s24 = smov %s2970_s25 }
 0x465   : > { %p20_p5 = scmp.ge.s32.totalorder %s23_s29, 4   ;;  %s4124_s25 = smov %s2974_s26 }
 0x466   : > { %s4125_s26 = smov %s3098_s15  ;;  %s4126_s27 = smov %s2982_s28 }
 0x467   : > { %s4127_s28 = smov %s4129_s9  ;;  %22 = sbr.rel (!%p20_p5) target bundleno = 6 (0x6), region = 96 }
 0x46e   :  { %2446 = vsyncpa [#allocation4], 1 }
 0x46f   :  { %2448 = vsyncpa [#allocation4 + $0x1], 1 }
 0x470   :  { %2449 = vsyncpa [#allocation5], 1 }
 0x471   :  { %2451 = vsyncpa [#allocation5 + $0x1], 1 }

</bundles_post_ra>
